<compile_context>
chip_gen: v7x
topology: tpu7x:2x2x1
jax: 0.10.0
libtpu: 0.0.40
codegen_flags: <defaults>
</compile_context>

<pallas_src>
import functools

import jax
import jax.numpy as jnp
import numpy as np
from jax.experimental import pallas as pl
from jax.experimental.pallas import tpu as pltpu


_PAD_L = 8  # left-pad columns in the VMEM slab; 8 keeps the interior store sublane-aligned


def _round_up(x, m):
    return ((x + m - 1) // m) * m


def _vmem_capacity_bytes():
    """Per-core VMEM capacity; conservative fallback (v7x per-TC size) if unavailable."""
    try:
        info = pltpu.get_tpu_info()
        for name in ("vmem_capacity_bytes", "vmem_size_bytes", "vmem_bytes"):
            v = getattr(info, name, None)
            if v:
                return int(v)
    except Exception:
        pass
    return 64 * 1024 * 1024


# --------------------------------- kernel ---------------------------------- #

def _bottleneck_kernel(*refs, expand, has_bot, residual, sd, nb,
                       th_out, th_in, H, W, Wo, cexp, cout, pad_l):
    it = iter(refs)
    xt_ref = next(it)                      # top halo rows   (nb, 1, W, cin)
    xm_ref = next(it)                      # main rows       (nb, th_in, W, cin)
    xb_ref = next(it) if has_bot else None  # bottom halo    (nb, 1, W, cin), sd == 1 only
    if expand:
        we_ref = next(it)                  # (cin, cexp)  BN scale folded in
        be_ref = next(it)                  # (1, cexp)
    wd_ref = next(it)                      # (3, 3, cexp) BN scale folded in
    bd_ref = next(it)                      # (1, cexp)
    wp_ref = next(it)                      # (cexp, cout) BN scale folded in
    bp_ref = next(it)                      # (1, cout)
    o_ref = next(it)
    hbuf = next(it)                        # (nb, rows_exp, Wpad, cexp) VMEM scratch

    f32 = jnp.float32
    r = pl.program_id(1)
    rows_exp = th_in + (2 if has_bot else 1)

    # ---- 1x1 expand + BN bias + ReLU6: main + halo rows share ONE matmul ----
    xm_v = xm_ref[...]
    parts = [xt_ref[...], xm_v]
    if has_bot:
        parts.append(xb_ref[...])
    xcat = jnp.concatenate(parts, axis=1)                     # (nb, rows_exp, W, cin)
    if expand:
        lhs = xcat.reshape(nb * rows_exp * W, xcat.shape[-1]).astype(we_ref.dtype)
        h = jnp.dot(lhs, we_ref[...], preferred_element_type=f32)
        h = jnp.clip(h + be_ref[...], 0.0, 6.0)
        h4 = h.reshape(nb, rows_exp, W, cexp)
    else:
        h4 = xcat.astype(f32)
    # Interior store starts at a sublane-aligned column offset (pad_l == 8).
    hbuf[:, :, pad_l:pad_l + W, :] = h4.astype(hbuf.dtype)

    # Zero ONLY the two conv-padding columns (everything else inside the 9-tap read
    # window is overwritten above) -- no per-step full-slab memset.
    zcol = jnp.zeros((nb, rows_exp, 1, cexp), hbuf.dtype)
    hbuf[:, :, pad_l - 1:pad_l, :] = zcol
    hbuf[:, :, pad_l + W:pad_l + W + 1, :] = zcol

    zrow = jnp.zeros((nb, 1, W, cexp), hbuf.dtype)

    @pl.when(r == 0)                       # top halo row is image row -1 -> zero padding
    def _():
        hbuf[:, 0:1, pad_l:pad_l + W, :] = zrow

    if has_bot:                            # bottom halo only exists / is read when sd == 1
        @pl.when((r + 1) * th_in >= H)
        def _():
            hbuf[:, th_in + 1:th_in + 2, pad_l:pad_l + W, :] = zrow

    # ---- 3x3 depthwise + BN bias + ReLU6 (f32 accumulation, per-tap Ref slices) ----
    wd = wd_ref[...].astype(f32)                               # (3, 3, cexp)
    acc = jnp.zeros((nb, th_out, Wo, cexp), f32)
    for dy in range(3):
        for dx in range(3):
            if sd == 1:
                tap = hbuf[:, pl.ds(dy, th_out), pl.ds(pad_l - 1 + dx, Wo), :]
            else:
                # TODO(synk): a one-time even/odd column de-interleave of hbuf would turn
                # these sublane-strided loads into contiguous ones for stride-2 blocks.
                tap = hbuf[:, pl.ds(dy, th_out, sd), pl.ds(pad_l - 1 + dx, Wo, sd), :]
            acc = acc + tap.astype(f32) * wd[dy, dx]
    ydw = jnp.clip(acc + bd_ref[...], 0.0, 6.0)                # (nb, th_out, Wo, cexp)

    # ---- 1x1 projection + BN bias (no ReLU) + optional residual ----
    m = nb * th_out * Wo
    yp = jnp.dot(ydw.reshape(m, cexp).astype(wp_ref.dtype), wp_ref[...],
                 preferred_element_type=f32)
    yp = yp + bp_ref[...]
    if residual:                           # only when cin == cout and sd == 1
        yp = yp + xm_v.reshape(m, cout).astype(f32)
    # TODO(synk): for lane-dense stores, pad cout to a multiple of 128 (realistic
    # MobileNetV2 widths) -- skipped for the tiny demo widths to avoid 16x output traffic.
    o_ref[...] = yp.reshape(nb, th_out, Wo, cout).astype(o_ref.dtype)


# ------------------------------ spec / tiling helpers ----------------------- #

def _rep_spec(shape):
    """Full-array block replicated across the whole grid (weights / biases)."""
    zero = (0,) * len(shape)
    return pl.BlockSpec(shape, lambda n, r, _z=zero: _z)


def _step_vmem_bytes(nb, th_out, *, sd, W, Wo, cin, cexp, cout, expand,
                     x_bytes, w_bytes, h_bytes):
    th_in = sd * th_out
    has_bot = (sd == 1)
    rows_exp = th_in + (2 if has_bot else 1)
    wpad = _round_up(_PAD_L + W + 1, 8)
    hbuf = nb * rows_exp * wpad * cexp * h_bytes                      # single scratch slab
    halo = 2 if has_bot else 1
    xin = 2 * nb * (th_in + halo) * W * cin * x_bytes                 # double-buffered in
    out = 2 * nb * th_out * Wo * cout * x_bytes                       # double-buffered out
    wts = 2 * ((cin * cexp if expand else 0) + 9 * cexp + cexp * cout) * w_bytes
    wts += 2 * (2 * cexp + cout) * 4                                  # biases kept in f32
    return hbuf + xin + out + wts


def _pick_tiles(N, H, Ho, W, Wo, sd, *, budget, **sz):
    """Largest evenly-dividing row tile fitting the VMEM budget, plus optional batch block."""
    cands = [d for d in range(1, Ho + 1) if Ho % d == 0 and H % (sd * d) == 0]
    if not cands:
        raise NotImplementedError("spatial size not tileable for this stride")
    th_out = cands[0]
    for d in cands:
        if _step_vmem_bytes(1, d, sd=sd, W=W, Wo=Wo, **sz) <= budget:
            th_out = max(th_out, d)
    n_tiles = Ho // th_out
    nb = 1
    # Block the batch dim only when a single tile's matmul M is small, keeping >= 2 grid
    # steps whenever possible so both v7x TensorCores get work.
    if th_out * Wo < 256:
        for d in sorted((d for d in range(2, N + 1) if N % d == 0), reverse=True):
            steps = (N // d) * n_tiles
            if steps < 2 and N * n_tiles >= 2:
                continue
            if _step_vmem_bytes(d, th_out, sd=sd, W=W, Wo=Wo, **sz) <= budget:
                nb = d
                break
    return nb, th_out


# ------------------------------- BottleNeck --------------------------------- #

class BottleNeckPallas:
    """Pallas TPU equivalent of the PyTorch BottleNeck module (inference-mode BN)."""

    def __init__(self, cin, t, cout, sd, key, dtype=jnp.float32):
        self.cin, self.t, self.cout, self.sd = cin, t, cout, sd
        self.c_exp = cin * t
        self.dtype = dtype     # bf16 on v6e/v7x halves VMEM/HBM traffic; demo keeps f32
        eps = 1e-5
        keys = jax.random.split(key, 16)

        # TODO(synk): BatchNorm is eval-mode only (folded running stats); training-mode
        # batch statistics are not reproduced.
        def bn_fold(k0, k1, k2, k3, c):
            gamma = jax.random.uniform(k0, (c,), jnp.float32, 0.5, 1.5)
            beta = jax.random.normal(k1, (c,), jnp.float32) * 0.1
            mean = jax.random.normal(k2, (c,), jnp.float32) * 0.1
            var = jax.random.uniform(k3, (c,), jnp.float32, 0.5, 1.5)
            scale = gamma / jnp.sqrt(var + eps)
            bias = beta - mean * scale
            return scale, bias

        if t != 1:
            w = jax.random.normal(keys[0], (cin, self.c_exp), jnp.float32) * 0.1
            s, b = bn_fold(keys[1], keys[2], keys[3], keys[4], self.c_exp)
            self.w_exp = (w * s[None, :]).astype(dtype)       # BN scale folded into weight
            self.b_exp = b.reshape(1, self.c_exp)

        w = jax.random.normal(keys[5], (3, 3, self.c_exp), jnp.float32) * 0.1
        s, b = bn_fold(keys[6], keys[7], keys[8], keys[9], self.c_exp)
        self.w_dw = (w * s[None, None, :]).astype(dtype)
        self.b_dw = b.reshape(1, self.c_exp)

        w = jax.random.normal(keys[10], (self.c_exp, cout), jnp.float32) * 0.1
        s, b = bn_fold(keys[11], keys[12], keys[13], keys[14], cout)
        self.w_proj = (w * s[None, :]).astype(dtype)
        self.b_proj = b.reshape(1, cout)

    def apply_nhwc(self, x):
        N, H, W, C = x.shape
        assert C == self.cin
        sd, cin, cexp, cout = self.sd, self.cin, self.c_exp, self.cout
        Ho = (H + 2 - 3) // sd + 1
        Wo = (W + 2 - 3) // sd + 1
        expand = self.t != 1
        residual = (cin == cout) and (sd == 1)
        has_bot = (sd == 1)

        hdtype = (jnp.float32 if np.dtype(self.dtype) == np.dtype(jnp.float32)
                  else jnp.bfloat16)
        sz = dict(cin=cin, cexp=cexp, cout=cout, expand=expand,
                  x_bytes=x.dtype.itemsize,
                  w_bytes=np.dtype(self.dtype).itemsize,
                  h_bytes=np.dtype(hdtype).itemsize)

        cap = _vmem_capacity_bytes()
        budget = min(int(cap * 0.65), 96 << 20)      # ~42 MiB on v7x, capped on v5e/v6e
        nb, th_out = _pick_tiles(N, H, Ho, W, Wo, sd, budget=budget, **sz)
        th_in = sd * th_out
        n_tiles = Ho // th_out
        rows_exp = th_in + (2 if has_bot else 1)
        wpad = _round_up(_PAD_L + W + 1, 8)

        need = _step_vmem_bytes(nb, th_out, sd=sd, W=W, Wo=Wo, **sz)
        vmem_limit = min(int(cap * 0.85), 100 << 20)
        vmem_limit = max(vmem_limit, min(need + (4 << 20), int(cap * 0.95)))

        x_top = pl.BlockSpec(
            (nb, 1, W, cin), lambda n, r: (n, jnp.maximum(r * th_in - 1, 0), 0, 0))
        x_main = pl.BlockSpec((nb, th_in, W, cin), lambda n, r: (n, r, 0, 0))
        in_specs = [x_top, x_main]
        args = [x, x]
        if has_bot:
            x_bot = pl.BlockSpec(
                (nb, 1, W, cin),
                lambda n, r: (n, jnp.minimum((r + 1) * th_in, H - 1), 0, 0))
            in_specs.append(x_bot)
            args.append(x)
        if expand:
            in_specs += [_rep_spec((cin, cexp)), _rep_spec((1, cexp))]
            args += [self.w_exp, self.b_exp]
        in_specs += [_rep_spec((3, 3, cexp)), _rep_spec((1, cexp)),
                     _rep_spec((cexp, cout)), _rep_spec((1, cout))]
        args += [self.w_dw, self.b_dw, self.w_proj, self.b_proj]

        kernel = functools.partial(
            _bottleneck_kernel, expand=expand, has_bot=has_bot, residual=residual,
            sd=sd, nb=nb, th_out=th_out, th_in=th_in, H=H, W=W, Wo=Wo,
            cexp=cexp, cout=cout, pad_l=_PAD_L)

        return pl.pallas_call(
            kernel,
            out_shape=jax.ShapeDtypeStruct((N, Ho, Wo, cout), x.dtype),
            grid=(N // nb, n_tiles),
            in_specs=in_specs,
            out_specs=pl.BlockSpec((nb, th_out, Wo, cout), lambda n, r: (n, r, 0, 0)),
            scratch_shapes=[pltpu.VMEM((nb, rows_exp, wpad, cexp), hdtype)],
            compiler_params=pltpu.CompilerParams(
                dimension_semantics=("parallel", "parallel"),
                vmem_limit_bytes=int(vmem_limit)),
        )(*args)

    def __call__(self, x_nchw):
        # NCHW in / NCHW out to mirror the PyTorch module.  NHWC pipelines should call
        # apply_nhwc() directly: each layout transpose is a full extra HBM round trip.
        x = jnp.transpose(x_nchw, (0, 2, 3, 1))
        return jnp.transpose(self.apply_nhwc(x), (0, 3, 1, 2))


# ----------------------------- pure-JAX reference --------------------------- #

def reference(m, x_nchw):
    x = jnp.transpose(x_nchw, (0, 2, 3, 1)).astype(jnp.float32)
    h = x
    if m.t != 1:
        h = jnp.einsum("nhwc,cd->nhwd", h, m.w_exp.astype(jnp.float32)) + m.b_exp[0]
        h = jnp.clip(h, 0.0, 6.0)
    wd = m.w_dw.astype(jnp.float32).reshape(3, 3, 1, m.c_exp)
    h = jax.lax.conv_general_dilated(
        h, wd, window_strides=(m.sd, m.sd), padding=((1, 1), (1, 1)),
        dimension_numbers=("NHWC", "HWIO", "NHWC"), feature_group_count=m.c_exp)
    h = jnp.clip(h + m.b_dw[0], 0.0, 6.0)
    out = jnp.einsum("nhwc,cd->nhwd", h, m.w_proj.astype(jnp.float32)) + m.b_proj[0]
    if m.cin == m.cout and m.sd == 1:
        out = out + x
    return jnp.transpose(out, (0, 3, 1, 2))


# ----------------------------------- main ----------------------------------- #

if __name__ == "__main__":
    root = jax.random.PRNGKey(0)
    configs = [
        # (N, cin, H, W, t, cout, sd)
        (2, 8, 16, 16, 2, 8, 1),    # expansion + residual path
        (2, 16, 16, 16, 1, 8, 1),   # t == 1 (no expansion), no residual
    ]
    for i, (N, cin, H, W, t, cout, sd) in enumerate(configs):
        k_param, k_x = jax.random.split(jax.random.fold_in(root, i))
        module = BottleNeckPallas(cin, t, cout, sd, k_param)
        x = jax.random.normal(k_x, (N, cin, H, W), jnp.float32)

        out = jax.block_until_ready(module(x))
        ref = jax.block_until_ready(reference(module, x))

        assert out.shape == ref.shape, (out.shape, ref.shape)
        np.testing.assert_allclose(np.asarray(out), np.asarray(ref),
                                   rtol=1e-4, atol=1e-4)

    print("KERNEL_OK")
</pallas_src>

<mosaic_0001>
module attributes {stable_mosaic.version = 11 : i64} {
  func.func @_bottleneck_kernel(%arg0: i32, %arg1: i32, %arg2: memref<1x1x16x8xf32, #tpu.memory_space<vmem>>, %arg3: memref<1x16x16x8xf32, #tpu.memory_space<vmem>>, %arg4: memref<1x1x16x8xf32, #tpu.memory_space<vmem>>, %arg5: memref<8x16xf32, #tpu.memory_space<vmem>>, %arg6: memref<1x16xf32, #tpu.memory_space<vmem>>, %arg7: memref<3x3x16xf32, #tpu.memory_space<vmem>>, %arg8: memref<1x16xf32, #tpu.memory_space<vmem>>, %arg9: memref<16x8xf32, #tpu.memory_space<vmem>>, %arg10: memref<1x8xf32, #tpu.memory_space<vmem>>, %arg11: memref<1x16x16x8xf32, #tpu.memory_space<vmem>>, %arg12: memref<1x18x32x16xf32, #tpu.memory_space<vmem>>) attributes {dimension_semantics = [#tpu.dimension_semantics<parallel>, #tpu.dimension_semantics<parallel>], iteration_bounds = array<i64: 2, 1>, scalar_prefetch = 0 : i64, scratch_operands = 1 : i64, tpu.core_type = #tpu.core_type<tc>, window_params = [{transform_indices = @transform_0, window_bounds = array<i64: 1, 1, 16, 8>}, {transform_indices = @transform_1, window_bounds = array<i64: 1, 16, 16, 8>}, {transform_indices = @transform_2, window_bounds = array<i64: 1, 1, 16, 8>}, {pipeline_mode = #tpu.pipeline_mode<synchronous>, transform_indices = @transform_3, window_bounds = array<i64: 8, 16>}, {pipeline_mode = #tpu.pipeline_mode<synchronous>, transform_indices = @transform_4, window_bounds = array<i64: 1, 16>}, {pipeline_mode = #tpu.pipeline_mode<synchronous>, transform_indices = @transform_5, window_bounds = array<i64: 3, 3, 16>}, {pipeline_mode = #tpu.pipeline_mode<synchronous>, transform_indices = @transform_6, window_bounds = array<i64: 1, 16>}, {pipeline_mode = #tpu.pipeline_mode<synchronous>, transform_indices = @transform_7, window_bounds = array<i64: 16, 8>}, {pipeline_mode = #tpu.pipeline_mode<synchronous>, transform_indices = @transform_8, window_bounds = array<i64: 1, 8>}, {transform_indices = @transform_9, window_bounds = array<i64: 1, 16, 16, 8>}]} {
    %c0 = arith.constant 0 : index
    %c0_0 = arith.constant 0 : index
    %c0_1 = arith.constant 0 : index
    %c0_2 = arith.constant 0 : index
    %0 = vector.load %arg3[%c0, %c0_0, %c0_1, %c0_2] : memref<1x16x16x8xf32, #tpu.memory_space<vmem>>, vector<1x16x16x8xf32>
    %c0_3 = arith.constant 0 : index
    %c0_4 = arith.constant 0 : index
    %c0_5 = arith.constant 0 : index
    %c0_6 = arith.constant 0 : index
    %1 = vector.load %arg2[%c0_3, %c0_4, %c0_5, %c0_6] : memref<1x1x16x8xf32, #tpu.memory_space<vmem>>, vector<1x1x16x8xf32>
    %c0_7 = arith.constant 0 : index
    %c0_8 = arith.constant 0 : index
    %c0_9 = arith.constant 0 : index
    %c0_10 = arith.constant 0 : index
    %2 = vector.load %arg4[%c0_7, %c0_8, %c0_9, %c0_10] : memref<1x1x16x8xf32, #tpu.memory_space<vmem>>, vector<1x1x16x8xf32>
    %3 = tpu.concatenate %1, %0, %2 in 1 : vector<1x1x16x8xf32>, vector<1x16x16x8xf32>, vector<1x1x16x8xf32> -> vector<1x18x16x8xf32>
    %4 = vector.shape_cast %3 : vector<1x18x16x8xf32> to vector<288x8xf32>
    %c0_11 = arith.constant 0 : index
    %c0_12 = arith.constant 0 : index
    %5 = vector.load %arg5[%c0_11, %c0_12] : memref<8x16xf32, #tpu.memory_space<vmem>>, vector<8x16xf32>
    %cst = arith.constant dense<0.000000e+00> : vector<288x16xf32>
    %6 = tpu.matmul %4, %5, %cst {dimension_numbers = #tpu.dot_dimension_numbers<[1], [0], [0], [1], [0, 0, 1, 1], [], []>} : vector<288x8xf32>, vector<8x16xf32>, vector<288x16xf32> -> vector<288x16xf32>
    %c0_13 = arith.constant 0 : index
    %c0_14 = arith.constant 0 : index
    %7 = vector.load %arg6[%c0_13, %c0_14] : memref<1x16xf32, #tpu.memory_space<vmem>>, vector<1x16xf32>
    %8 = vector.broadcast %7 : vector<1x16xf32> to vector<288x16xf32>
    %9 = arith.addf %6, %8 : vector<288x16xf32>
    %cst_15 = arith.constant 0.000000e+00 : f32
    %cst_16 = arith.constant 6.000000e+00 : f32
    %10 = vector.broadcast %cst_15 : f32 to vector<288x16xf32>
    %11 = arith.maximumf %10, %9 : vector<288x16xf32>
    %12 = vector.broadcast %cst_16 : f32 to vector<288x16xf32>
    %13 = arith.minimumf %12, %11 : vector<288x16xf32>
    %14 = vector.shape_cast %13 : vector<288x16xf32> to vector<1x18x16x16xf32>
    %c0_17 = arith.constant 0 : index
    %c0_18 = arith.constant 0 : index
    %c8 = arith.constant 8 : index
    %c0_19 = arith.constant 0 : index
    %15 = vector.load %arg12[%c0_17, %c0_18, %c8, %c0_19] : memref<1x18x32x16xf32, #tpu.memory_space<vmem>>, vector<1x18x16x16xf32>
    tpu.vector_store %arg12[%c0_17, %c0_18, %c8, %c0_19], %14 {strides = array<i32>} : memref<1x18x32x16xf32, #tpu.memory_space<vmem>>, vector<1x18x16x16xf32>,
    %cst_20 = arith.constant 0.000000e+00 : f32
    %16 = vector.broadcast %cst_20 : f32 to vector<1x18x1x16xf32>
    %c0_21 = arith.constant 0 : index
    %c0_22 = arith.constant 0 : index
    %c7 = arith.constant 7 : index
    %c0_23 = arith.constant 0 : index
    %17 = vector.load %arg12[%c0_21, %c0_22, %c7, %c0_23] : memref<1x18x32x16xf32, #tpu.memory_space<vmem>>, vector<1x18x1x16xf32>
    tpu.vector_store %arg12[%c0_21, %c0_22, %c7, %c0_23], %16 {strides = array<i32>} : memref<1x18x32x16xf32, #tpu.memory_space<vmem>>, vector<1x18x1x16xf32>,
    %c0_24 = arith.constant 0 : index
    %c0_25 = arith.constant 0 : index
    %c24 = arith.constant 24 : index
    %c0_26 = arith.constant 0 : index
    %18 = vector.load %arg12[%c0_24, %c0_25, %c24, %c0_26] : memref<1x18x32x16xf32, #tpu.memory_space<vmem>>, vector<1x18x1x16xf32>
    tpu.vector_store %arg12[%c0_24, %c0_25, %c24, %c0_26], %16 {strides = array<i32>} : memref<1x18x32x16xf32, #tpu.memory_space<vmem>>, vector<1x18x1x16xf32>,
    %cst_27 = arith.constant 0.000000e+00 : f32
    %19 = vector.broadcast %cst_27 : f32 to vector<1x1x16x16xf32>
    %c0_i32 = arith.constant 0 : i32
    %20 = arith.cmpi eq, %arg1, %c0_i32 : i32
    %21 = arith.extui %20 : i1 to i32
    %c0_i32_28 = arith.constant 0 : i32
    %22 = arith.cmpi ne, %21, %c0_i32_28 : i32
    scf.if %22 {
      %c0_81 = arith.constant 0 : index
      %c0_82 = arith.constant 0 : index
      %c8_83 = arith.constant 8 : index
      %c0_84 = arith.constant 0 : index
      %111 = vector.load %arg12[%c0_81, %c0_82, %c8_83, %c0_84] : memref<1x18x32x16xf32, #tpu.memory_space<vmem>>, vector<1x1x16x16xf32>
      tpu.vector_store %arg12[%c0_81, %c0_82, %c8_83, %c0_84], %19 {strides = array<i32>} : memref<1x18x32x16xf32, #tpu.memory_space<vmem>>, vector<1x1x16x16xf32>,
    } else {
    }
    %c1_i32 = arith.constant 1 : i32
    %23 = arith.addi %arg1, %c1_i32 : i32
    %c16_i32 = arith.constant 16 : i32
    %24 = arith.muli %23, %c16_i32 : i32
    %c16_i32_29 = arith.constant 16 : i32
    %25 = arith.cmpi sge, %24, %c16_i32_29 : i32
    %26 = arith.extui %25 : i1 to i32
    %c0_i32_30 = arith.constant 0 : i32
    %27 = arith.cmpi ne, %26, %c0_i32_30 : i32
    scf.if %27 {
      %c0_81 = arith.constant 0 : index
      %c17 = arith.constant 17 : index
      %c8_82 = arith.constant 8 : index
      %c0_83 = arith.constant 0 : index
      %111 = vector.load %arg12[%c0_81, %c17, %c8_82, %c0_83] : memref<1x18x32x16xf32, #tpu.memory_space<vmem>>, vector<1x1x16x16xf32>
      tpu.vector_store %arg12[%c0_81, %c17, %c8_82, %c0_83], %19 {strides = array<i32>} : memref<1x18x32x16xf32, #tpu.memory_space<vmem>>, vector<1x1x16x16xf32>,
    } else {
    }
    %c0_31 = arith.constant 0 : index
    %c0_32 = arith.constant 0 : index
    %c0_33 = arith.constant 0 : index
    %28 = vector.load %arg7[%c0_31, %c0_32, %c0_33] : memref<3x3x16xf32, #tpu.memory_space<vmem>>, vector<3x3x16xf32>
    %cst_34 = arith.constant 0.000000e+00 : f32
    %29 = vector.broadcast %cst_34 : f32 to vector<1x16x16x16xf32>
    %c0_35 = arith.constant 0 : index
    %c0_36 = arith.constant 0 : index
    %c7_37 = arith.constant 7 : index
    %c0_38 = arith.constant 0 : index
    %30 = vector.load %arg12[%c0_35, %c0_36, %c7_37, %c0_38] : memref<1x18x32x16xf32, #tpu.memory_space<vmem>>, vector<1x16x16x16xf32>
    %31 = vector.extract_strided_slice %28 {offsets = [0, 0, 0], sizes = [1, 1, 16], strides = [1, 1, 1]} : vector<3x3x16xf32> to vector<1x1x16xf32>
    %32 = vector.shape_cast %31 : vector<1x1x16xf32> to vector<16xf32>
    %33 = vector.shape_cast %32 : vector<16xf32> to vector<1x1x1x16xf32>
    %34 = vector.broadcast %33 : vector<1x1x1x16xf32> to vector<1x16x16x16xf32>
    %35 = arith.mulf %30, %34 : vector<1x16x16x16xf32>
    %36 = arith.addf %29, %35 : vector<1x16x16x16xf32>
    %c0_39 = arith.constant 0 : index
    %c0_40 = arith.constant 0 : index
    %c8_41 = arith.constant 8 : index
    %c0_42 = arith.constant 0 : index
    %37 = vector.load %arg12[%c0_39, %c0_40, %c8_41, %c0_42] : memref<1x18x32x16xf32, #tpu.memory_space<vmem>>, vector<1x16x16x16xf32>
    %38 = vector.extract_strided_slice %28 {offsets = [0, 1, 0], sizes = [1, 1, 16], strides = [1, 1, 1]} : vector<3x3x16xf32> to vector<1x1x16xf32>
    %39 = vector.shape_cast %38 : vector<1x1x16xf32> to vector<16xf32>
    %40 = vector.shape_cast %39 : vector<16xf32> to vector<1x1x1x16xf32>
    %41 = vector.broadcast %40 : vector<1x1x1x16xf32> to vector<1x16x16x16xf32>
    %42 = arith.mulf %37, %41 : vector<1x16x16x16xf32>
    %43 = arith.addf %36, %42 : vector<1x16x16x16xf32>
    %c0_43 = arith.constant 0 : index
    %c0_44 = arith.constant 0 : index
    %c9 = arith.constant 9 : index
    %c0_45 = arith.constant 0 : index
    %44 = vector.load %arg12[%c0_43, %c0_44, %c9, %c0_45] : memref<1x18x32x16xf32, #tpu.memory_space<vmem>>, vector<1x16x16x16xf32>
    %45 = vector.extract_strided_slice %28 {offsets = [0, 2, 0], sizes = [1, 1, 16], strides = [1, 1, 1]} : vector<3x3x16xf32> to vector<1x1x16xf32>
    %46 = vector.shape_cast %45 : vector<1x1x16xf32> to vector<16xf32>
    %47 = vector.shape_cast %46 : vector<16xf32> to vector<1x1x1x16xf32>
    %48 = vector.broadcast %47 : vector<1x1x1x16xf32> to vector<1x16x16x16xf32>
    %49 = arith.mulf %44, %48 : vector<1x16x16x16xf32>
    %50 = arith.addf %43, %49 : vector<1x16x16x16xf32>
    %c0_46 = arith.constant 0 : index
    %c1 = arith.constant 1 : index
    %c7_47 = arith.constant 7 : index
    %c0_48 = arith.constant 0 : index
    %51 = vector.load %arg12[%c0_46, %c1, %c7_47, %c0_48] : memref<1x18x32x16xf32, #tpu.memory_space<vmem>>, vector<1x16x16x16xf32>
    %52 = vector.extract_strided_slice %28 {offsets = [1, 0, 0], sizes = [1, 1, 16], strides = [1, 1, 1]} : vector<3x3x16xf32> to vector<1x1x16xf32>
    %53 = vector.shape_cast %52 : vector<1x1x16xf32> to vector<16xf32>
    %54 = vector.shape_cast %53 : vector<16xf32> to vector<1x1x1x16xf32>
    %55 = vector.broadcast %54 : vector<1x1x1x16xf32> to vector<1x16x16x16xf32>
    %56 = arith.mulf %51, %55 : vector<1x16x16x16xf32>
    %57 = arith.addf %50, %56 : vector<1x16x16x16xf32>
    %c0_49 = arith.constant 0 : index
    %c1_50 = arith.constant 1 : index
    %c8_51 = arith.constant 8 : index
    %c0_52 = arith.constant 0 : index
    %58 = vector.load %arg12[%c0_49, %c1_50, %c8_51, %c0_52] : memref<1x18x32x16xf32, #tpu.memory_space<vmem>>, vector<1x16x16x16xf32>
    %59 = vector.extract_strided_slice %28 {offsets = [1, 1, 0], sizes = [1, 1, 16], strides = [1, 1, 1]} : vector<3x3x16xf32> to vector<1x1x16xf32>
    %60 = vector.shape_cast %59 : vector<1x1x16xf32> to vector<16xf32>
    %61 = vector.shape_cast %60 : vector<16xf32> to vector<1x1x1x16xf32>
    %62 = vector.broadcast %61 : vector<1x1x1x16xf32> to vector<1x16x16x16xf32>
    %63 = arith.mulf %58, %62 : vector<1x16x16x16xf32>
    %64 = arith.addf %57, %63 : vector<1x16x16x16xf32>
    %c0_53 = arith.constant 0 : index
    %c1_54 = arith.constant 1 : index
    %c9_55 = arith.constant 9 : index
    %c0_56 = arith.constant 0 : index
    %65 = vector.load %arg12[%c0_53, %c1_54, %c9_55, %c0_56] : memref<1x18x32x16xf32, #tpu.memory_space<vmem>>, vector<1x16x16x16xf32>
    %66 = vector.extract_strided_slice %28 {offsets = [1, 2, 0], sizes = [1, 1, 16], strides = [1, 1, 1]} : vector<3x3x16xf32> to vector<1x1x16xf32>
    %67 = vector.shape_cast %66 : vector<1x1x16xf32> to vector<16xf32>
    %68 = vector.shape_cast %67 : vector<16xf32> to vector<1x1x1x16xf32>
    %69 = vector.broadcast %68 : vector<1x1x1x16xf32> to vector<1x16x16x16xf32>
    %70 = arith.mulf %65, %69 : vector<1x16x16x16xf32>
    %71 = arith.addf %64, %70 : vector<1x16x16x16xf32>
    %c0_57 = arith.constant 0 : index
    %c2 = arith.constant 2 : index
    %c7_58 = arith.constant 7 : index
    %c0_59 = arith.constant 0 : index
    %72 = vector.load %arg12[%c0_57, %c2, %c7_58, %c0_59] : memref<1x18x32x16xf32, #tpu.memory_space<vmem>>, vector<1x16x16x16xf32>
    %73 = vector.extract_strided_slice %28 {offsets = [2, 0, 0], sizes = [1, 1, 16], strides = [1, 1, 1]} : vector<3x3x16xf32> to vector<1x1x16xf32>
    %74 = vector.shape_cast %73 : vector<1x1x16xf32> to vector<16xf32>
    %75 = vector.shape_cast %74 : vector<16xf32> to vector<1x1x1x16xf32>
    %76 = vector.broadcast %75 : vector<1x1x1x16xf32> to vector<1x16x16x16xf32>
    %77 = arith.mulf %72, %76 : vector<1x16x16x16xf32>
    %78 = arith.addf %71, %77 : vector<1x16x16x16xf32>
    %c0_60 = arith.constant 0 : index
    %c2_61 = arith.constant 2 : index
    %c8_62 = arith.constant 8 : index
    %c0_63 = arith.constant 0 : index
    %79 = vector.load %arg12[%c0_60, %c2_61, %c8_62, %c0_63] : memref<1x18x32x16xf32, #tpu.memory_space<vmem>>, vector<1x16x16x16xf32>
    %80 = vector.extract_strided_slice %28 {offsets = [2, 1, 0], sizes = [1, 1, 16], strides = [1, 1, 1]} : vector<3x3x16xf32> to vector<1x1x16xf32>
    %81 = vector.shape_cast %80 : vector<1x1x16xf32> to vector<16xf32>
    %82 = vector.shape_cast %81 : vector<16xf32> to vector<1x1x1x16xf32>
    %83 = vector.broadcast %82 : vector<1x1x1x16xf32> to vector<1x16x16x16xf32>
    %84 = arith.mulf %79, %83 : vector<1x16x16x16xf32>
    %85 = arith.addf %78, %84 : vector<1x16x16x16xf32>
    %c0_64 = arith.constant 0 : index
    %c2_65 = arith.constant 2 : index
    %c9_66 = arith.constant 9 : index
    %c0_67 = arith.constant 0 : index
    %86 = vector.load %arg12[%c0_64, %c2_65, %c9_66, %c0_67] : memref<1x18x32x16xf32, #tpu.memory_space<vmem>>, vector<1x16x16x16xf32>
    %87 = vector.extract_strided_slice %28 {offsets = [2, 2, 0], sizes = [1, 1, 16], strides = [1, 1, 1]} : vector<3x3x16xf32> to vector<1x1x16xf32>
    %88 = vector.shape_cast %87 : vector<1x1x16xf32> to vector<16xf32>
    %89 = vector.shape_cast %88 : vector<16xf32> to vector<1x1x1x16xf32>
    %90 = vector.broadcast %89 : vector<1x1x1x16xf32> to vector<1x16x16x16xf32>
    %91 = arith.mulf %86, %90 : vector<1x16x16x16xf32>
    %92 = arith.addf %85, %91 : vector<1x16x16x16xf32>
    %c0_68 = arith.constant 0 : index
    %c0_69 = arith.constant 0 : index
    %93 = vector.load %arg8[%c0_68, %c0_69] : memref<1x16xf32, #tpu.memory_space<vmem>>, vector<1x16xf32>
    %94 = vector.shape_cast %93 : vector<1x16xf32> to vector<1x1x1x16xf32>
    %95 = vector.broadcast %94 : vector<1x1x1x16xf32> to vector<1x16x16x16xf32>
    %96 = arith.addf %92, %95 : vector<1x16x16x16xf32>
    %cst_70 = arith.constant 0.000000e+00 : f32
    %cst_71 = arith.constant 6.000000e+00 : f32
    %97 = vector.broadcast %cst_70 : f32 to vector<1x16x16x16xf32>
    %98 = arith.maximumf %97, %96 : vector<1x16x16x16xf32>
    %99 = vector.broadcast %cst_71 : f32 to vector<1x16x16x16xf32>
    %100 = arith.minimumf %99, %98 : vector<1x16x16x16xf32>
    %101 = vector.shape_cast %100 : vector<1x16x16x16xf32> to vector<256x16xf32>
    %c0_72 = arith.constant 0 : index
    %c0_73 = arith.constant 0 : index
    %102 = vector.load %arg9[%c0_72, %c0_73] : memref<16x8xf32, #tpu.memory_space<vmem>>, vector<16x8xf32>
    %cst_74 = arith.constant dense<0.000000e+00> : vector<256x8xf32>
    %103 = tpu.matmul %101, %102, %cst_74 {dimension_numbers = #tpu.dot_dimension_numbers<[1], [0], [0], [1], [0, 0, 1, 1], [], []>} : vector<256x16xf32>, vector<16x8xf32>, vector<256x8xf32> -> vector<256x8xf32>
    %c0_75 = arith.constant 0 : index
    %c0_76 = arith.constant 0 : index
    %104 = vector.load %arg10[%c0_75, %c0_76] : memref<1x8xf32, #tpu.memory_space<vmem>>, vector<1x8xf32>
    %105 = vector.broadcast %104 : vector<1x8xf32> to vector<256x8xf32>
    %106 = arith.addf %103, %105 : vector<256x8xf32>
    %107 = vector.shape_cast %0 : vector<1x16x16x8xf32> to vector<256x8xf32>
    %108 = arith.addf %106, %107 : vector<256x8xf32>
    %109 = vector.shape_cast %108 : vector<256x8xf32> to vector<1x16x16x8xf32>
    %c0_77 = arith.constant 0 : index
    %c0_78 = arith.constant 0 : index
    %c0_79 = arith.constant 0 : index
    %c0_80 = arith.constant 0 : index
    %110 = vector.load %arg11[%c0_77, %c0_78, %c0_79, %c0_80] : memref<1x16x16x8xf32, #tpu.memory_space<vmem>>, vector<1x16x16x8xf32>
    tpu.vector_store %arg11[%c0_77, %c0_78, %c0_79, %c0_80], %109 {strides = array<i32>} : memref<1x16x16x8xf32, #tpu.memory_space<vmem>>, vector<1x16x16x8xf32>,
    return
  }
  func.func @transform_0(%arg0: i32, %arg1: i32) -> (i32, i32, i32, i32) {
    %c16_i32 = arith.constant 16 : i32
    %0 = arith.muli %arg1, %c16_i32 : i32
    %c1_i32 = arith.constant 1 : i32
    %1 = arith.subi %0, %c1_i32 : i32
    %c0_i32 = arith.constant 0 : i32
    %2 = arith.maxsi %1, %c0_i32 : i32
    %c0_i32_0 = arith.constant 0 : i32
    %c0_i32_1 = arith.constant 0 : i32
    %c0_i32_2 = arith.constant 0 : i32
    return %arg0, %2, %c0_i32_0, %c0_i32_1 : i32, i32, i32, i32
  }
  func.func @transform_1(%arg0: i32, %arg1: i32) -> (i32, i32, i32, i32) {
    %c0_i32 = arith.constant 0 : i32
    %c0_i32_0 = arith.constant 0 : i32
    %c0_i32_1 = arith.constant 0 : i32
    return %arg0, %arg1, %c0_i32, %c0_i32_0 : i32, i32, i32, i32
  }
  func.func @transform_2(%arg0: i32, %arg1: i32) -> (i32, i32, i32, i32) {
    %c1_i32 = arith.constant 1 : i32
    %0 = arith.addi %arg1, %c1_i32 : i32
    %c16_i32 = arith.constant 16 : i32
    %1 = arith.muli %0, %c16_i32 : i32
    %c15_i32 = arith.constant 15 : i32
    %2 = arith.minsi %1, %c15_i32 : i32
    %c0_i32 = arith.constant 0 : i32
    %c0_i32_0 = arith.constant 0 : i32
    %c0_i32_1 = arith.constant 0 : i32
    return %arg0, %2, %c0_i32, %c0_i32_0 : i32, i32, i32, i32
  }
  func.func @transform_3(%arg0: i32, %arg1: i32) -> (i32, i32) {
    %c0_i32 = arith.constant 0 : i32
    %c0_i32_0 = arith.constant 0 : i32
    %c0_i32_1 = arith.constant 0 : i32
    return %c0_i32, %c0_i32_0 : i32, i32
  }
  func.func @transform_4(%arg0: i32, %arg1: i32) -> (i32, i32) {
    %c0_i32 = arith.constant 0 : i32
    %c0_i32_0 = arith.constant 0 : i32
    %c0_i32_1 = arith.constant 0 : i32
    return %c0_i32, %c0_i32_0 : i32, i32
  }
  func.func @transform_5(%arg0: i32, %arg1: i32) -> (i32, i32, i32) {
    %c0_i32 = arith.constant 0 : i32
    %c0_i32_0 = arith.constant 0 : i32
    %c0_i32_1 = arith.constant 0 : i32
    %c0_i32_2 = arith.constant 0 : i32
    return %c0_i32, %c0_i32_0, %c0_i32_1 : i32, i32, i32
  }
  func.func @transform_6(%arg0: i32, %arg1: i32) -> (i32, i32) {
    %c0_i32 = arith.constant 0 : i32
    %c0_i32_0 = arith.constant 0 : i32
    %c0_i32_1 = arith.constant 0 : i32
    return %c0_i32, %c0_i32_0 : i32, i32
  }
  func.func @transform_7(%arg0: i32, %arg1: i32) -> (i32, i32) {
    %c0_i32 = arith.constant 0 : i32
    %c0_i32_0 = arith.constant 0 : i32
    %c0_i32_1 = arith.constant 0 : i32
    return %c0_i32, %c0_i32_0 : i32, i32
  }
  func.func @transform_8(%arg0: i32, %arg1: i32) -> (i32, i32) {
    %c0_i32 = arith.constant 0 : i32
    %c0_i32_0 = arith.constant 0 : i32
    %c0_i32_1 = arith.constant 0 : i32
    return %c0_i32, %c0_i32_0 : i32, i32
  }
  func.func @transform_9(%arg0: i32, %arg1: i32) -> (i32, i32, i32, i32) {
    %c0_i32 = arith.constant 0 : i32
    %c0_i32_0 = arith.constant 0 : i32
    %c0_i32_1 = arith.constant 0 : i32
    return %arg0, %arg1, %c0_i32, %c0_i32_0 : i32, i32, i32, i32
  }
}

</mosaic_0001>

<bundles_post_ra>
// kernel: tpu_custom_call.1
= control target key start
LH: loop header
LB: loop body
LE: loop exit
PB: predicated region body
PF: predicated region fallthrough
CT: control target
= control target key end

     0   :  { %s3010_s30 = smov 0   ;;  %s3012_s10 = smov 0   ;;  %s4270_s0 = inlined_call_operand.vmem [shape: f32[2,16,16,8], index: 0, kind: input, shape index: {}]   ;;  %s4271_s1 = inlined_call_operand.vmem [shape: f32[2,16,16,8], index: 1, kind: input, shape index: {}]   ;;  %s4272_s2 = inlined_call_operand.vmem [shape: f32[2,16,16,8], index: 2, kind: input, shape index: {}]   ;;  %s4273_s3 = inlined_call_operand.vmem [shape: f32[8,16], index: 3, kind: input, shape index: {}]   ;;  %s4274_s4 = inlined_call_operand.vmem [shape: f32[1,16], index: 4, kind: input, shape index: {}]   ;;  %s4275_s5 = inlined_call_operand.vmem [shape: f32[3,3,16], index: 5, kind: input, shape index: {}]   ;;  %s4276_s6 = inlined_call_operand.vmem [shape: f32[1,16], index: 6, kind: input, shape index: {}]   ;;  %s4277_s7 = inlined_call_operand.vmem [shape: f32[16,8], index: 7, kind: input, shape index: {}]   ;;  %s4278_s8 = inlined_call_operand.vmem [shape: f32[1,8], index: 8, kind: input, shape index: {}]   ;;  %s4279_s9 = inlined_call_operand.vmem [shape: f32[2,16,16,8], index: 9, kind: output, shape index: {}]  }
   0x1   :  { %s3014_s11 = smov 0  }
   0x2 LB: > { %s31_s12 = sadd.s32 1, %s2953_s10  ;;  %p2604_p0 = scmp.ge.s32.totalorder %s2957_s11, 1  ;;  %s2957_s11 = sphi %s3014_s11, %s19_s11   ;;  %s2953_s10 = sphi %s3012_s10, %s4281_s10   ;;  %s2949_s30 = sphi %s3010_s30, %s4280_s30  }
   0x3   : > { %p33_p1 = scmp.ge.s32.totalorder %s31_s12, 2  ;;  %p373_p2 = scmp.lt.s32.totalorder %s2957_s11, 3 }
   0x5   : > { %s4283_s12 = smov (%p33_p1, %s31_s12), 0  ;;  %p374_p3 = pnand %p2604_p0, %p373_p2 }
   0x6   : > { %v537_v0 = vld [vmem:[%s4273_s3] sm:$0xff] (!%p374_p3)  ;;  %p449_p4 = scmp.lt.s32.totalorder (!%p374_p3), %s2949_s30, 1  ;;  %vm545_vm0 = vcmask (!%p374_p3), 64512   ;;  %vm1008_vm1 = vcmask (!%p374_p3), 122880   ;;  %v2959_v37 = vmov (!%p374_p3), 0.0   ;;  %v2069_v39 = vld [vmem:[%s4277_s7 + $0x8] sm:$0xff] (!%p374_p3)  ;;  %v1095_v43 = vlaneseq (!%p374_p3) }
   0x7   : > { %377 = sbr.rel (%p374_p3) target bundleno = 658 (0x292), region = 56  ;;  %2763 = vmatprep.subr.mxu0 (!%p374_p3), %v537_v0  ;;  %2875 = vmatprep.subr.mxu1 (!%p374_p3), %v537_v0  ;;  %1009 = vst.msk [vmem:[#allocation2 + $0x7] sm:$0x1] (!%p374_p3), %vm1008_vm1, %v2959_v37  ;;  %1010 = vst.msk [vmem:[#allocation2 + $0x27] sm:$0x1] (!%p374_p3), %vm1008_vm1, %v2959_v37  ;;  %v2068_v38 = vld [vmem:[%s4277_s7] sm:$0xff] (!%p374_p3) }
   0x8   : > { %2764 = vmatpush3.msra.mxu0 (!%p374_p3), %v537_v0  ;;  %2876 = vmatpush3.msra.mxu1 (!%p374_p3), %v537_v0  ;;  %1011 = vst.msk [vmem:[#allocation2 + $0x47] sm:$0x1] (!%p374_p3), %vm1008_vm1, %v2959_v37  ;;  %1012 = vst.msk [vmem:[#allocation2 + $0x67] sm:$0x1] (!%p374_p3), %vm1008_vm1, %v2959_v37  ;;  %v2871_v40 = vpack.c.bf16 (!%p374_p3), %v2069_v39, %v2068_v38  ;;  %v3196_v41 = vld [vmem:[%s4274_s4] ss:$0 sm:$0xff] (!%p374_p3) }
   0x9   : > { %1013 = vst.msk [vmem:[#allocation2 + $0x87] sm:$0x1] (!%p374_p3), %vm1008_vm1, %v2959_v37  ;;  %1014 = vst.msk [vmem:[#allocation2 + $0xa7] sm:$0x1] (!%p374_p3), %vm1008_vm1, %v2959_v37  ;;  %vm971_vm2 = vcmask (!%p374_p3), 130048   ;;  %v1096_v50 = vshrl.u32 (!%p374_p3), %v1095_v43, 7 }
   0xa   : > { %1015 = vst.msk [vmem:[#allocation2 + $0xc7] sm:$0x1] (!%p374_p3), %vm1008_vm1, %v2959_v37  ;;  %1016 = vst.msk [vmem:[#allocation2 + $0xe7] sm:$0x1] (!%p374_p3), %vm1008_vm1, %v2959_v37  ;;  %2872 = vmatprep.subr.bf16.mxu1 (!%p374_p3), %v2871_v40  ;;  %v1060_v63 = vld [vmem:[%s4275_s5] sm:$0x7] (!%p374_p3) }
   0xb   : > { %1017 = vst.msk [vmem:[#allocation2 + $0x107] sm:$0x1] (!%p374_p3), %vm1008_vm1, %v2959_v37  ;;  %1018 = vst.msk [vmem:[#allocation2 + $0x127] sm:$0x1] (!%p374_p3), %vm1008_vm1, %v2959_v37  ;;  %v1197_v59 = vsub.s32 (!%p374_p3), 1, %v1096_v50  ;;  %v1097_v0 = vsub.s32 (!%p374_p3), 0, %v1096_v50 }
   0xc   : > { %1019 = vst.msk [vmem:[#allocation2 + $0x147] sm:$0x1] (!%p374_p3), %vm1008_vm1, %v2959_v37  ;;  %1020 = vst.msk [vmem:[#allocation2 + $0x167] sm:$0x1] (!%p374_p3), %vm1008_vm1, %v2959_v37 }
   0xd   : > { %1021 = vst.msk [vmem:[#allocation2 + $0x187] sm:$0x1] (!%p374_p3), %vm1008_vm1, %v2959_v37  ;;  %1022 = vst.msk [vmem:[#allocation2 + $0x1a7] sm:$0x1] (!%p374_p3), %vm1008_vm1, %v2959_v37 }
   0xe   : > { %s4285_s30 = smov (!%p449_p4, %s2949_s30), 1  ;;  %1023 = vst.msk [vmem:[#allocation2 + $0x1c7] sm:$0x1] %vm1008_vm1, %v2959_v37  ;;  %1024 = vst.msk [vmem:[#allocation2 + $0x1e7] sm:$0x1] %vm1008_vm1, %v2959_v37 }
   0xf   : > { %s3031_s15 = sshll.u32 %s4285_s30, 8  ;;  %1025 = vst.msk [vmem:[#allocation2 + $0x207] sm:$0x1] %vm1008_vm1, %v2959_v37  ;;  %1026 = vst.msk [vmem:[#allocation2 + $0x227] sm:$0x1] %vm1008_vm1, %v2959_v37 }
  0x10   : > { %s457_s18 = scalar_lea.vmem %s4270_s0, %s3031_s15  ;;  %s3041_s21 = scalar_lea.vmem %s4271_s1, %s3031_s15  ;;  %1027 = vst.msk [vmem:[#allocation2 + $0x18] sm:$0x1] %vm1008_vm1, %v2959_v37  ;;  %1028 = vst.msk [vmem:[#allocation2 + $0x38] sm:$0x1] %vm1008_vm1, %v2959_v37 }
  0x11   : > { %v533_v1 = vld [vmem:[%s457_s18] sm:$0xff]  ;;  %v534_v2 = vld [vmem:[%s457_s18 + $0x8] sm:$0xff]  ;;  %v503_v5 = vld [vmem:[%s3041_s21 + $0x10] sm:$0xff]  ;;  %s2689_s22 = sadd.s32 240, %s3031_s15  ;;  %1029 = vst.msk [vmem:[#allocation2 + $0x58] sm:$0x1] %vm1008_vm1, %v2959_v37  ;;  %s4132_s30 = scalar_lea.vmem %s4279_s9, %s3031_s15 }
  0x12   : > { %v501_v3 = vld [vmem:[%s3041_s21] sm:$0xff]  ;;  %2765 = vmatprep.mubr.msk.f32.mxu0 %vm545_vm0, %v533_v1  ;;  %v502_v4 = vld [vmem:[%s3041_s21 + $0x8] sm:$0xff]  ;;  %v504_v6 = vld [vmem:[%s3041_s21 + $0x18] sm:$0xff]  ;;  %s485_s25 = scalar_lea.vmem %s4272_s2, %s2689_s22  ;;  %1030 = vst.msk [vmem:[#allocation2 + $0x78] sm:$0x1] %vm1008_vm1, %v2959_v37  ;;  %v1297_v1 = vsub.s32 2, %v1096_v50 }
  0x13   : > { %2766 = vmatmul.mubr.msk.f32.vlgmr.msra.gmra.mrb[0].mxu0 %vm545_vm0, %v534_v2  ;;  %v505_v7 = vld [vmem:[%s3041_s21 + $0x20] sm:$0xff]  ;;  %v506_v8 = vld [vmem:[%s3041_s21 + $0x28] sm:$0xff]  ;;  %v507_v11 = vld [vmem:[%s3041_s21 + $0x30] sm:$0xff]  ;;  %1031 = vst.msk [vmem:[#allocation2 + $0x98] sm:$0x1] %vm1008_vm1, %v2959_v37 }
  0x14   : > { %2768 = vmatprep.mubr.msk.f32.mxu0 %vm545_vm0, %v501_v3  ;;  %v535_v9 = vld [vmem:[%s485_s25] sm:$0xff]  ;;  %v536_v10 = vld [vmem:[%s485_s25 + $0x8] sm:$0xff]  ;;  %v508_v12 = vld [vmem:[%s3041_s21 + $0x38] sm:$0xff]  ;;  %1032 = vst.msk [vmem:[#allocation2 + $0xb8] sm:$0x1] %vm1008_vm1, %v2959_v37 }
  0x15   : > { %2816 = vmatprep.mubr.msk.f32.mxu1 %vm545_vm0, %v535_v9  ;;  %v509_v13 = vld [vmem:[%s3041_s21 + $0x40] sm:$0xff]  ;;  %v510_v14 = vld [vmem:[%s3041_s21 + $0x48] sm:$0xff]  ;;  %v511_v15 = vld [vmem:[%s3041_s21 + $0x50] sm:$0xff]  ;;  %1033 = vst.msk [vmem:[#allocation2 + $0xd8] sm:$0x1] %vm1008_vm1, %v2959_v37 }
  0x16   : > { %2817 = vmatmul.mubr.msk.f32.vlgmr.msra.gmra.mrb[0].mxu1 %vm545_vm0, %v536_v10  ;;  %v512_v16 = vld [vmem:[%s3041_s21 + $0x58] sm:$0xff]  ;;  %v513_v17 = vld [vmem:[%s3041_s21 + $0x60] sm:$0xff]  ;;  %v514_v18 = vld [vmem:[%s3041_s21 + $0x68] sm:$0xff]  ;;  %1034 = vst.msk [vmem:[#allocation2 + $0xf8] sm:$0x1] %vm1008_vm1, %v2959_v37  ;;  %v3221_v10 = vrot.slane %v1060_v63, %v1197_v59 }
  0x17   : > { %2769 = vmatmul.mubr.msk.f32.gmra.mrb[2].mxu0 %vm545_vm0, %v502_v4  ;;  %v515_v19 = vld [vmem:[%s3041_s21 + $0x70] sm:$0xff]  ;;  %v516_v20 = vld [vmem:[%s3041_s21 + $0x78] sm:$0xff]  ;;  %v517_v21 = vld [vmem:[%s3041_s21 + $0x80] sm:$0xff]  ;;  %1035 = vst.msk [vmem:[#allocation2 + $0x118] sm:$0x1] %vm1008_vm1, %v2959_v37  ;;  %2874 = vmatpush3.bf16.msra.mxu1 %v2871_v40 }
  0x18   : > { %2771 = vmatprep.mubr.msk.f32.mxu0 %vm545_vm0, %v503_v5  ;;  %v518_v22 = vld [vmem:[%s3041_s21 + $0x88] sm:$0xff]  ;;  %v519_v23 = vld [vmem:[%s3041_s21 + $0x90] sm:$0xff]  ;;  %v520_v24 = vld [vmem:[%s3041_s21 + $0x98] sm:$0xff]  ;;  %1036 = vst.msk [vmem:[#allocation2 + $0x138] sm:$0x1] %vm1008_vm1, %v2959_v37 }
  0x19   : > { %v521_v25 = vld [vmem:[%s3041_s21 + $0xa0] sm:$0xff]  ;;  %v522_v26 = vld [vmem:[%s3041_s21 + $0xa8] sm:$0xff]  ;;  %v523_v27 = vld [vmem:[%s3041_s21 + $0xb0] sm:$0xff]  ;;  %1037 = vst.msk [vmem:[#allocation2 + $0x158] sm:$0x1] %vm1008_vm1, %v2959_v37 }
  0x1a   : > { %v524_v28 = vld [vmem:[%s3041_s21 + $0xb8] sm:$0xff]  ;;  %v525_v29 = vld [vmem:[%s3041_s21 + $0xc0] sm:$0xff]  ;;  %v526_v30 = vld [vmem:[%s3041_s21 + $0xc8] sm:$0xff]  ;;  %1038 = vst.msk [vmem:[#allocation2 + $0x178] sm:$0x1] %vm1008_vm1, %v2959_v37 }
  0x1b   : > { %2772 = vmatmul.mubr.msk.f32.gmra.mrb[4].mxu0 %vm545_vm0, %v504_v6  ;;  %v527_v31 = vld [vmem:[%s3041_s21 + $0xd0] sm:$0xff]  ;;  %v528_v32 = vld [vmem:[%s3041_s21 + $0xd8] sm:$0xff]  ;;  %v529_v33 = vld [vmem:[%s3041_s21 + $0xe0] sm:$0xff]  ;;  %1039 = vst.msk [vmem:[#allocation2 + $0x198] sm:$0x1] %vm1008_vm1, %v2959_v37 }
  0x1c   : > { %2774 = vmatprep.mubr.msk.f32.mxu0 %vm545_vm0, %v505_v7  ;;  %v530_v34 = vld [vmem:[%s3041_s21 + $0xe8] sm:$0xff]  ;;  %v531_v35 = vld [vmem:[%s3041_s21 + $0xf0] sm:$0xff]  ;;  %v532_v36 = vld [vmem:[%s3041_s21 + $0xf8] sm:$0xff]  ;;  %1040 = vst.msk [vmem:[#allocation2 + $0x1b8] sm:$0x1] %vm1008_vm1, %v2959_v37 }
  0x1d   : > { %1041 = vst.msk [vmem:[#allocation2 + $0x1d8] sm:$0x1] %vm1008_vm1, %v2959_v37  ;;  %1042 = vst.msk [vmem:[#allocation2 + $0x1f8] sm:$0x1] %vm1008_vm1, %v2959_v37  ;;  %v1061_v5 = vld [vmem:[%s4275_s5 + $0x4] sm:$0x7] }
  0x1e   : > { %1043 = vst.msk [vmem:[#allocation2 + $0x218] sm:$0x1] %vm1008_vm1, %v2959_v37  ;;  %1044 = vst.msk [vmem:[#allocation2 + $0x238] sm:$0x1] %vm1008_vm1, %v2959_v37  ;;  %v1062_v9 = vld [vmem:[%s4275_s5 + $0x8] sm:$0x7] }
  0x1f   : > { %2775 = vmatmul.mubr.msk.f32.gmra.mrb[6].mxu0 %vm545_vm0, %v506_v8 }
  0x20   : > { %2777 = vmatprep.mubr.msk.f32.mxu0 %vm545_vm0, %v507_v11 }
  0x23   : > { %2778 = vmatmul.mubr.msk.f32.gmra.mrb[8].mxu0 %vm545_vm0, %v508_v12 }
  0x24   : > { %2780 = vmatprep.mubr.msk.f32.mxu0 %vm545_vm0, %v509_v13 }
  0x27   : > { %2781 = vmatmul.mubr.msk.f32.gmra.mrb[10].mxu0 %vm545_vm0, %v510_v14 }
  0x28   : > { %2783 = vmatprep.mubr.msk.f32.mxu0 %vm545_vm0, %v511_v15 }
  0x2b   : > { %2784 = vmatmul.mubr.msk.f32.gmra.mrb[12].mxu0 %vm545_vm0, %v512_v16  ;;  %v3227_v16 = vrot.slane %v1060_v63, %v1097_v0 }
  0x2c   : > { %2786 = vmatprep.mubr.msk.f32.mxu0 %vm545_vm0, %v513_v17  ;;  %v3229_v17 = vrot.slane %v1060_v63, %v1297_v1 }
  0x2f   : > { %2787 = vmatmul.mubr.msk.f32.gmra.mrb[14].mxu0 %vm545_vm0, %v514_v18 }
  0x30   : > { %2789 = vmatprep.mubr.msk.f32.mxu0 %vm545_vm0, %v515_v19 }
  0x33   : > { %2790 = vmatmul.mubr.msk.f32.gmra.mrb[16].mxu0 %vm545_vm0, %v516_v20  ;;  %v3232_v20 = vrot.slane %v1061_v5, %v1097_v0 }
  0x34   : > { %2792 = vmatprep.mubr.msk.f32.mxu0 %vm545_vm0, %v517_v21 }
  0x37   : > { %2793 = vmatmul.mubr.msk.f32.gmra.mrb[18].mxu0 %vm545_vm0, %v518_v22 }
  0x38   : > { %2795 = vmatprep.mubr.msk.f32.mxu0 %vm545_vm0, %v519_v23  ;;  %v3235_v23 = vrot.slane %v1061_v5, %v1197_v59 }
  0x3b   : > { %2796 = vmatmul.mubr.msk.f32.gmra.mrb[20].mxu0 %vm545_vm0, %v520_v24  ;;  %v3237_v24 = vrot.slane %v1061_v5, %v1297_v1 }
  0x3c   : > { %2798 = vmatprep.mubr.msk.f32.mxu0 %vm545_vm0, %v521_v25  ;;  %v3239_v25 = vrot.slane %v1062_v9, %v1097_v0 }
  0x3f   : > { %2799 = vmatmul.mubr.msk.f32.gmra.mrb[22].mxu0 %vm545_vm0, %v522_v26 }
  0x40   : > { %2801 = vmatprep.mubr.msk.f32.mxu0 %vm545_vm0, %v523_v27 }
  0x43   : > { %2802 = vmatmul.mubr.msk.f32.gmra.mrb[24].mxu0 %vm545_vm0, %v524_v28 }
  0x44   : > { %2804 = vmatprep.mubr.msk.f32.mxu0 %vm545_vm0, %v525_v29 }
  0x47   : > { %2805 = vmatmul.mubr.msk.f32.gmra.mrb[26].mxu0 %vm545_vm0, %v526_v30 }
  0x48   : > { %2807 = vmatprep.mubr.msk.f32.mxu0 %vm545_vm0, %v527_v31 }
  0x4b   : > { %2808 = vmatmul.mubr.msk.f32.gmra.mrb[28].mxu0 %vm545_vm0, %v528_v32 }
  0x4c   : > { %2810 = vmatprep.mubr.msk.f32.mxu0 %vm545_vm0, %v529_v33  ;;  %v3242_v33 = vrot.slane %v1062_v9, %v1197_v59 }
  0x4f   : > { %2811 = vmatmul.mubr.msk.f32.gmra.mrb[30].mxu0 %vm545_vm0, %v530_v34 }
  0x50   : > { %2813 = vmatprep.mubr.msk.f32.mxu0 %vm545_vm0, %v531_v35 }
  0x53   : > { %2814 = vmatmul.mubr.msk.f32.gmra.mrb[32].mxu0 %vm545_vm0, %v532_v36 }
  0xe6   : > { %v2767_v42 = vpop.f32.mrb[0].mxu0 }
  0xe7   : > { %v726_v44 = vadd.f32 %v2767_v42, %v3196_v41  ;;  %v720_v45 = vpop.f32.mrb[1].mxu0 }
  0xe8   : > { %v721_v46 = vadd.f32 %v3196_v41, %v720_v45 }
  0xe9   : > { %v900_v47 = vmax.f32 %v726_v44, 0.0  ;;  %v2818_v6 = vpop.f32.mrb[0].mxu1 }
  0xea   : > { %v899_v48 = vmax.f32 %v721_v46, 0.0  ;;  %v2770_v49 = vpop.f32.mrb[2].mxu0  ;;  %v896_v11 = vadd.f32 %v2818_v6, %v3196_v41  ;;  %v3224_v12 = vpop.f32.mrb[1].mxu1 }
  0xeb   : > { %v936_v51 = vmin.f32 %v900_v47, 6.0  ;;  %v736_v52 = vadd.f32 %v2770_v49, %v3196_v41  ;;  %v730_v53 = vpop.f32.mrb[3].mxu0 }
  0xec   : > { %v935_v54 = vmin.f32 %v899_v48, 6.0  ;;  %v731_v55 = vadd.f32 %v3196_v41, %v730_v53  ;;  %v934_v21 = vmax.f32 %v896_v11, 0.0 }
  0xed   : > { %973 = vst.msk [vmem:[#allocation2 + $0x10] sm:$0xff] %vm971_vm2, %v936_v51  ;;  %v902_v56 = vmax.f32 %v736_v52, 0.0 }
  0xee   : > { %1050 = vst.msk [vmem:[#allocation2 + $0x10] sm:$0xff] %vm971_vm2, %v2959_v37  ;;  %972 = vst.msk [vmem:[#allocation2 + $0x8] sm:$0xff] %vm971_vm2, %v935_v54  ;;  %v901_v57 = vmax.f32 %v731_v55, 0.0  ;;  %v2773_v58 = vpop.f32.mrb[4].mxu0  ;;  %v970_v35 = vmin.f32 %v934_v21, 6.0  ;;  %v3257_v54 = vrot.slane %v1062_v9, %v1297_v1 }
  0xef   : > { %1049 = vst.msk [vmem:[#allocation2 + $0x8] sm:$0xff] %vm971_vm2, %v2959_v37  ;;  %v938_v60 = vmin.f32 %v902_v56, 6.0  ;;  %v746_v61 = vadd.f32 %v2773_v58, %v3196_v41  ;;  %v740_v62 = vpop.f32.mrb[5].mxu0 }
  0xf0   : > { %v937_v2 = vmin.f32 %v901_v57, 6.0  ;;  %v741_v3 = vadd.f32 %v3196_v41, %v740_v62  ;;  %1007 = vst.msk [vmem:[#allocation2 + $0x230] sm:$0xff] %vm971_vm2, %v970_v35 }
  0xf1   : > { %975 = vst.msk [vmem:[#allocation2 + $0x30] sm:$0xff] %vm971_vm2, %v938_v60  ;;  %v904_v4 = vmax.f32 %v746_v61, 0.0  ;;  %1059 = vst.msk [vmem:[#allocation2 + $0x230] sm:$0xff] %vm971_vm2, %v2959_v37 }
  0xf2   : > { %974 = vst.msk [vmem:[#allocation2 + $0x28] sm:$0xff] %vm971_vm2, %v937_v2  ;;  %v903_v7 = vmax.f32 %v741_v3, 0.0  ;;  %v2776_v8 = vpop.f32.mrb[6].mxu0 }
  0xf3   : > { %v940_v13 = vmin.f32 %v904_v4, 6.0  ;;  %v756_v14 = vadd.f32 %v2776_v8, %v3196_v41  ;;  %v750_v15 = vpop.f32.mrb[7].mxu0 }
  0xf4   : > { %v939_v18 = vmin.f32 %v903_v7, 6.0  ;;  %v751_v19 = vadd.f32 %v3196_v41, %v750_v15 }
  0xf5   : > { %977 = vst.msk [vmem:[#allocation2 + $0x50] sm:$0xff] %vm971_vm2, %v940_v13  ;;  %v906_v22 = vmax.f32 %v756_v14, 0.0  ;;  %v1164_v26 = vld [vmem:[#allocation2 + $0x10] sm:$0xff] }
  0xf6   : > { %v1264_v27 = vld [vmem:[#allocation2 + $0x11] sm:$0xff]  ;;  %976 = vst.msk [vmem:[#allocation2 + $0x48] sm:$0xff] %vm971_vm2, %v939_v18  ;;  %v905_v28 = vmax.f32 %v751_v19, 0.0  ;;  %v2779_v29 = vpop.f32.mrb[8].mxu0  ;;  %v1063_v30 = vld [vmem:[#allocation2 + $0x7] sm:$0xff]  ;;  %v1200_v34 = vmul.f32 %v3221_v10, %v1164_v26 }
  0xf7   : > { %v1163_v31 = vld [vmem:[#allocation2 + $0x8] sm:$0xff]  ;;  %v942_v36 = vmin.f32 %v906_v22, 6.0  ;;  %v766_v38 = vadd.f32 %v2779_v29, %v3196_v41  ;;  %v760_v39 = vpop.f32.mrb[9].mxu0  ;;  %v1099_v40 = vmul.f32 %v3227_v16, %v1063_v30  ;;  %v1300_v55 = vmul.f32 %v3229_v17, %v1264_v27 }
  0xf8   : > { %v1263_v32 = vld [vmem:[#allocation2 + $0x9] sm:$0xff]  ;;  %v1199_v42 = vmul.f32 %v3221_v10, %v1163_v31  ;;  %v941_v44 = vmin.f32 %v905_v28, 6.0  ;;  %v761_v45 = vadd.f32 %v3196_v41, %v760_v39  ;;  %v3253_v49 = vld [vmem:[#allocation2 + $0x31] sm:$0xff] }
  0xf9   : > { %v1064_v43 = vld [vmem:[#allocation2 + $0xf] sm:$0xff]  ;;  %v1299_v46 = vmul.f32 %v3229_v17, %v1263_v32  ;;  %979 = vst.msk [vmem:[#allocation2 + $0x70] sm:$0xff] %vm971_vm2, %v942_v36  ;;  %v908_v50 = vmax.f32 %v766_v38, 0.0  ;;  %v1364_v52 = vld [vmem:[#allocation2 + $0x27] sm:$0xff]  ;;  %v1601_v62 = vmul.f32 %v3237_v24, %v3253_v49 }
  0xfa   : > { %v1100_v47 = vmul.f32 %v3227_v16, %v1064_v43  ;;  %v3251_v48 = vld [vmem:[#allocation2 + $0x30] sm:$0xff]  ;;  %v1231_v51 = vadd.f32 %v1199_v42, %v1099_v40  ;;  %v1464_v53 = vld [vmem:[#allocation2 + $0x28] sm:$0xff]  ;;  %978 = vst.msk [vmem:[#allocation2 + $0x68] sm:$0xff] %vm971_vm2, %v941_v44  ;;  %v907_v56 = vmax.f32 %v761_v45, 0.0  ;;  %v2782_v57 = vpop.f32.mrb[10].mxu0  ;;  %v1400_v58 = vmul.f32 %v3232_v20, %v1364_v52 }
  0xfb   : > { %v1564_v59 = vld [vmem:[#allocation2 + $0x29] sm:$0xff]  ;;  %v1501_v61 = vmul.f32 %v3235_v23, %v3251_v48  ;;  %v944_v63 = vmin.f32 %v908_v50, 6.0  ;;  %v776_v0 = vadd.f32 %v2782_v57, %v3196_v41  ;;  %v770_v1 = vpop.f32.mrb[11].mxu0  ;;  %v1500_v6 = vmul.f32 %v3235_v23, %v1464_v53 }
  0xfc   : > { %v3264_v60 = vld [vmem:[#allocation2 + $0x2f] sm:$0xff]  ;;  %v1331_v2 = vadd.f32 %v1299_v46, %v1231_v51  ;;  %v1232_v3 = vadd.f32 %v1200_v34, %v1100_v47  ;;  %v943_v4 = vmin.f32 %v907_v56, 6.0  ;;  %v771_v5 = vadd.f32 %v3196_v41, %v770_v1 }
  0xfd   : > { %v1401_v7 = vmul.f32 %v3232_v20, %v3264_v60  ;;  %v3275_v8 = vld [vmem:[#allocation2 + $0x50] sm:$0xff]  ;;  %981 = vst.msk [vmem:[#allocation2 + $0x90] sm:$0xff] %vm971_vm2, %v944_v63  ;;  %v910_v9 = vmax.f32 %v776_v0, 0.0  ;;  %v1600_v13 = vmul.f32 %v3237_v24, %v1564_v59  ;;  %v3279_v14 = vld [vmem:[#allocation2 + $0x47] sm:$0xff]  ;;  %v1101_v28 = vmul.f32 %v1364_v52, %v3227_v16 }
  0xfe   : > { %v1432_v11 = vadd.f32 %v1400_v58, %v1331_v2  ;;  %v3281_v15 = vld [vmem:[#allocation2 + $0x48] sm:$0xff]  ;;  %v1332_v19 = vadd.f32 %v1300_v55, %v1232_v3  ;;  %980 = vst.msk [vmem:[#allocation2 + $0x88] sm:$0xff] %vm971_vm2, %v943_v4  ;;  %v909_v21 = vmax.f32 %v771_v5, 0.0  ;;  %v2785_v22 = vpop.f32.mrb[12].mxu0  ;;  %v1701_v26 = vmul.f32 %v3239_v25, %v3279_v14  ;;  %v3294_v36 = vld [vmem:[#allocation2 + $0x51] sm:$0xff] }
  0xff   : > { %v3283_v18 = vld [vmem:[#allocation2 + $0x49] sm:$0xff]  ;;  %v1802_v27 = vmul.f32 %v3242_v33, %v3275_v8  ;;  %v946_v29 = vmin.f32 %v910_v9, 6.0  ;;  %v786_v30 = vadd.f32 %v2785_v22, %v3196_v41  ;;  %v780_v31 = vpop.f32.mrb[13].mxu0  ;;  %v1801_v40 = vmul.f32 %v3242_v33, %v3281_v15  ;;  %v3322_v9 = vld [vmem:[%s4276_s6] ss:$0 sm:$0xff] }
 0x100   : > { %v1532_v32 = vadd.f32 %v1500_v6, %v1432_v11  ;;  %v1433_v34 = vadd.f32 %v1401_v7, %v1332_v19  ;;  %v3292_v35 = vld [vmem:[#allocation2 + $0x4f] sm:$0xff]  ;;  %v945_v38 = vmin.f32 %v909_v21, 6.0  ;;  %v781_v39 = vadd.f32 %v3196_v41, %v780_v31 }
 0x101   : > { %v1901_v42 = vmul.f32 %v3257_v54, %v3283_v18  ;;  %983 = vst.msk [vmem:[#allocation2 + $0xb0] sm:$0xff] %vm971_vm2, %v946_v29  ;;  %v912_v43 = vmax.f32 %v786_v30, 0.0  ;;  %v1201_v46 = vmul.f32 %v1464_v53, %v3221_v10  ;;  %v1702_v51 = vmul.f32 %v3239_v25, %v3292_v35  ;;  %v3310_v0 = vld [vmem:[#allocation2 + $0x67] sm:$0xff] }
 0x102   : > { %v1632_v44 = vadd.f32 %v1600_v13, %v1532_v32  ;;  %v1533_v45 = vadd.f32 %v1501_v61, %v1433_v34  ;;  %982 = vst.msk [vmem:[#allocation2 + $0xa8] sm:$0xff] %vm971_vm2, %v945_v38  ;;  %v911_v47 = vmax.f32 %v781_v39, 0.0  ;;  %v2788_v50 = vpop.f32.mrb[14].mxu0  ;;  %v1902_v52 = vmul.f32 %v3257_v54, %v3294_v36 }
 0x103   : > { %v1301_v55 = vmul.f32 %v1564_v59, %v3229_v17  ;;  %v948_v56 = vmin.f32 %v912_v43, 6.0  ;;  %v796_v57 = vadd.f32 %v2788_v50, %v3196_v41  ;;  %v790_v58 = vpop.f32.mrb[15].mxu0  ;;  %v1233_v2 = vadd.f32 %v1201_v46, %v1101_v28 }
 0x104   : > { %v1733_v63 = vadd.f32 %v1701_v26, %v1632_v44  ;;  %v1633_v61 = vadd.f32 %v1601_v62, %v1533_v45  ;;  %v947_v53 = vmin.f32 %v911_v47, 6.0  ;;  %v791_v1 = vadd.f32 %v3196_v41, %v790_v58  ;;  %v3337_v45 = vld [vmem:[#allocation2 + $0x68] sm:$0xff] }
 0x105   : > { %v1402_v3 = vmul.f32 %v3279_v14, %v3232_v20  ;;  %985 = vst.msk [vmem:[#allocation2 + $0xd0] sm:$0xff] %vm971_vm2, %v948_v56  ;;  %v914_v4 = vmax.f32 %v796_v57, 0.0  ;;  %v1502_v6 = vmul.f32 %v3281_v15, %v3235_v23  ;;  %v1333_v11 = vadd.f32 %v1301_v55, %v1233_v2  ;;  %v3345_v55 = vld [vmem:[#allocation2 + $0x69] sm:$0xff] }
 0x106   : > { %v1833_v5 = vadd.f32 %v1801_v40, %v1733_v63  ;;  %v1734_v59 = vadd.f32 %v1702_v51, %v1633_v61  ;;  %984 = vst.msk [vmem:[#allocation2 + $0xc8] sm:$0xff] %vm971_vm2, %v947_v53  ;;  %v913_v62 = vmax.f32 %v791_v1, 0.0  ;;  %v2791_v7 = vpop.f32.mrb[16].mxu0  ;;  %v1602_v13 = vmul.f32 %v3283_v18, %v3237_v24 }
 0x107   : > { %v1703_v19 = vmul.f32 %v3239_v25, %v3310_v0  ;;  %v950_v21 = vmin.f32 %v914_v4, 6.0  ;;  %v806_v22 = vadd.f32 %v2791_v7, %v3196_v41  ;;  %v800_v26 = vpop.f32.mrb[17].mxu0  ;;  %v1434_v32 = vadd.f32 %v1402_v3, %v1333_v11 }
 0x108   : > { %v1933_v28 = vadd.f32 %v1901_v42, %v1833_v5  ;;  %v1834_v29 = vadd.f32 %v1802_v27, %v1734_v59  ;;  %v949_v30 = vmin.f32 %v913_v62, 6.0  ;;  %v801_v31 = vadd.f32 %v3196_v41, %v800_v26 }
 0x109   : > { %v1102_v34 = vmul.f32 %v3264_v60, %v3227_v16  ;;  %987 = vst.msk [vmem:[#allocation2 + $0xf0] sm:$0xff] %vm971_vm2, %v950_v21  ;;  %v916_v38 = vmax.f32 %v806_v22, 0.0  ;;  %v1202_v43 = vmul.f32 %v3251_v48, %v3221_v10  ;;  %v1534_v44 = vadd.f32 %v1502_v6, %v1434_v32 }
 0x10a   : > { %v1972_v39 = vadd.f32 %v3322_v9, %v1933_v28  ;;  %v1934_v40 = vadd.f32 %v1902_v52, %v1834_v29  ;;  %986 = vst.msk [vmem:[#allocation2 + $0xe8] sm:$0xff] %vm971_vm2, %v949_v30  ;;  %v915_v42 = vmax.f32 %v801_v31, 0.0  ;;  %v2794_v27 = vpop.f32.mrb[18].mxu0  ;;  %v1302_v46 = vmul.f32 %v3253_v49, %v3229_v17 }
 0x10b   : > { %v1403_v60 = vmul.f32 %v3292_v35, %v3232_v20  ;;  %v952_v47 = vmin.f32 %v916_v38, 6.0  ;;  %v816_v50 = vadd.f32 %v2794_v27, %v3196_v41  ;;  %v810_v51 = vpop.f32.mrb[19].mxu0  ;;  %v1634_v58 = vadd.f32 %v1602_v13, %v1534_v44 }
 0x10c   : > { %v2004_v52 = vmax.f32 %v1972_v39, 0.0  ;;  %v1973_v48 = vadd.f32 %v3322_v9, %v1934_v40  ;;  %v951_v56 = vmin.f32 %v915_v42, 6.0  ;;  %v811_v57 = vadd.f32 %v3196_v41, %v810_v51 }
 0x10d   : > { %v1234_v63 = vadd.f32 %v1202_v43, %v1102_v34  ;;  %989 = vst.msk [vmem:[#allocation2 + $0x110] sm:$0xff] %vm971_vm2, %v952_v47  ;;  %v918_v49 = vmax.f32 %v816_v50, 0.0  ;;  %v1803_v1 = vmul.f32 %v3242_v33, %v3337_v45  ;;  %v1735_v4 = vadd.f32 %v1703_v19, %v1634_v58  ;;  %v3359_v19 = vld [vmem:[#allocation2 + $0x6f] sm:$0xff] }
 0x10e   : > { %v2036_v61 = vmin.f32 %v2004_v52, 6.0  ;;  %v2005_v53 = vmax.f32 %v1973_v48, 0.0  ;;  %988 = vst.msk [vmem:[#allocation2 + $0x108] sm:$0xff] %vm971_vm2, %v951_v56  ;;  %v917_v2 = vmax.f32 %v811_v57, 0.0  ;;  %v2797_v3 = vpop.f32.mrb[20].mxu0  ;;  %v1903_v5 = vmul.f32 %v3257_v54, %v3345_v55 }
 0x10f   : > { %v1334_v59 = vadd.f32 %v1302_v46, %v1234_v63  ;;  %v954_v6 = vmin.f32 %v918_v49, 6.0  ;;  %v826_v62 = vadd.f32 %v2797_v3, %v3196_v41  ;;  %v820_v7 = vpop.f32.mrb[21].mxu0  ;;  %v1503_v13 = vmul.f32 %v3275_v8, %v3235_v23  ;;  %v3373_v46 = vld [vmem:[#allocation2 + $0x70] sm:$0xff] }
 0x110   : > { %2823 = vmatprep.mubr.msk.f32.mxu1 %vm971_vm2, %v2036_v61  ;;  %v2037_v11 = vmin.f32 %v2005_v53, 6.0  ;;  %v953_v21 = vmin.f32 %v917_v2, 6.0  ;;  %v821_v22 = vadd.f32 %v3196_v41, %v820_v7  ;;  %v1835_v26 = vadd.f32 %v1803_v1, %v1735_v4  ;;  %v3398_v7 = vld [vmem:[#allocation2 + $0x88] sm:$0xff] }
 0x111   : > { %v1435_v28 = vadd.f32 %v1403_v60, %v1334_v59  ;;  %991 = vst.msk [vmem:[#allocation2 + $0x130] sm:$0xff] %vm971_vm2, %v954_v6  ;;  %v920_v29 = vmax.f32 %v826_v62, 0.0  ;;  %v1603_v30 = vmul.f32 %v3294_v36, %v3237_v24  ;;  %v1103_v31 = vmul.f32 %v3279_v14, %v3227_v16 }
 0x112   : > { %2824 = vmatmul.mubr.msk.f32.vlgmr.msra.gmra.mrb[2].mxu1 %vm971_vm2, %v2037_v11  ;;  %990 = vst.msk [vmem:[#allocation2 + $0x128] sm:$0xff] %vm971_vm2, %v953_v21  ;;  %v919_v32 = vmax.f32 %v821_v22, 0.0  ;;  %v2800_v34 = vpop.f32.mrb[22].mxu0  ;;  %v1935_v38 = vadd.f32 %v1903_v5, %v1835_v26  ;;  %v1203_v40 = vmul.f32 %v3281_v15, %v3221_v10  ;;  %v1704_v44 = vmul.f32 %v3239_v25, %v3359_v19  ;;  %v3381_v15 = vld [vmem:[#allocation2 + $0x71] sm:$0xff] }
 0x113   : > { %v1535_v39 = vadd.f32 %v1503_v13, %v1435_v28  ;;  %v956_v43 = vmin.f32 %v920_v29, 6.0  ;;  %v836_v42 = vadd.f32 %v2800_v34, %v3196_v41  ;;  %v830_v27 = vpop.f32.mrb[23].mxu0  ;;  %v3377_v14 = vadd.f32 %v3196_v41, %v3224_v12 }
 0x114   : > { %v955_v60 = vmin.f32 %v919_v32, 6.0  ;;  %v1974_v47 = vadd.f32 %v3322_v9, %v1935_v38  ;;  %v831_v50 = vadd.f32 %v3196_v41, %v830_v27  ;;  %v1235_v48 = vadd.f32 %v1203_v40, %v1103_v31 }
 0x115   : > { %v1635_v51 = vadd.f32 %v1603_v30, %v1535_v39  ;;  %993 = vst.msk [vmem:[#allocation2 + $0x150] sm:$0xff] %vm971_vm2, %v956_v43  ;;  %v922_v52 = vmax.f32 %v836_v42, 0.0  ;;  %v1303_v56 = vmul.f32 %v3283_v18, %v3229_v17  ;;  %v1404_v57 = vmul.f32 %v3310_v0, %v3232_v20  ;;  %v3394_v18 = vld [vmem:[#allocation2 + $0x87] sm:$0xff] }
 0x116   : > { %992 = vst.msk [vmem:[#allocation2 + $0x148] sm:$0xff] %vm971_vm2, %v955_v60  ;;  %v2006_v12 = vmax.f32 %v1974_v47, 0.0  ;;  %v921_v58 = vmax.f32 %v831_v50, 0.0  ;;  %v1804_v49 = vmul.f32 %v3242_v33, %v3373_v46  ;;  %v2803_v61 = vpop.f32.mrb[24].mxu0  ;;  %v1904_v1 = vmul.f32 %v3257_v54, %v3381_v15  ;;  %v3410_v30 = vld [vmem:[#allocation2 + $0x89] sm:$0xff] }
 0x117   : > { %v1736_v63 = vadd.f32 %v1704_v44, %v1635_v51  ;;  %v958_v53 = vmin.f32 %v922_v52, 6.0  ;;  %v846_v2 = vadd.f32 %v2803_v61, %v3196_v41  ;;  %v1335_v3 = vadd.f32 %v1303_v56, %v1235_v48  ;;  %v840_v4 = vpop.f32.mrb[25].mxu0  ;;  %v3421_v60 = vld [vmem:[#allocation2 + $0x8f] sm:$0xff] }
 0x118   : > { %v2038_v5 = vmin.f32 %v2006_v12, 6.0  ;;  %v957_v59 = vmin.f32 %v921_v58, 6.0  ;;  %v1504_v62 = vmul.f32 %v3337_v45, %v3235_v23  ;;  %v841_v21 = vadd.f32 %v3196_v41, %v840_v4  ;;  %v3428_v52 = vld [vmem:[#allocation2 + $0x90] sm:$0xff] }
 0x119   : > { %v1836_v6 = vadd.f32 %v1804_v49, %v1736_v63  ;;  %995 = vst.msk [vmem:[#allocation2 + $0x170] sm:$0xff] %vm971_vm2, %v958_v53  ;;  %v924_v11 = vmax.f32 %v846_v2, 0.0  ;;  %v1436_v13 = vadd.f32 %v1404_v57, %v1335_v3  ;;  %v1104_v22 = vmul.f32 %v3292_v35, %v3227_v16  ;;  %v3438_v61 = vld [vmem:[#allocation2 + $0x91] sm:$0xff] }
 0x11a   : > { %2826 = vmatprep.mubr.msk.f32.mxu1 %vm971_vm2, %v2038_v5  ;;  %994 = vst.msk [vmem:[#allocation2 + $0x168] sm:$0xff] %vm971_vm2, %v957_v59  ;;  %v1604_v28 = vmul.f32 %v3345_v55, %v3237_v24  ;;  %v1705_v29 = vmul.f32 %v3239_v25, %v3394_v18  ;;  %v1204_v31 = vmul.f32 %v3275_v8, %v3221_v10  ;;  %v2806_v32 = vpop.f32.mrb[26].mxu0  ;;  %v923_v39 = vmax.f32 %v841_v21, 0.0 }
 0x11b   : > { %v1936_v26 = vadd.f32 %v1904_v1, %v1836_v6  ;;  %v960_v34 = vmin.f32 %v924_v11, 6.0  ;;  %v1536_v38 = vadd.f32 %v1504_v62, %v1436_v13  ;;  %v1805_v35 = vmul.f32 %v3242_v33, %v3398_v7  ;;  %v850_v40 = vpop.f32.mrb[27].mxu0  ;;  %v3450_v11 = vld [vmem:[#allocation2 + $0xa7] sm:$0xff] }
 0x11c   : > { %v1236_v42 = vadd.f32 %v1204_v31, %v1104_v22  ;;  %v1304_v27 = vmul.f32 %v3294_v36, %v3229_v17  ;;  %v1405_v44 = vmul.f32 %v3359_v19, %v3232_v20  ;;  %v1905_v47 = vmul.f32 %v3257_v54, %v3410_v30 }
 0x11d   : > { %v1975_v43 = vadd.f32 %v3322_v9, %v1936_v26  ;;  %997 = vst.msk [vmem:[#allocation2 + $0x190] sm:$0xff] %vm971_vm2, %v960_v34  ;;  %v1636_v8 = vadd.f32 %v1604_v28, %v1536_v38  ;;  %v959_v50 = vmin.f32 %v923_v39, 6.0  ;;  %v1505_v51 = vmul.f32 %v3373_v46, %v3235_v23  ;;  %v3457_v26 = vld [vmem:[#allocation2 + $0xa8] sm:$0xff] }
 0x11e   : > { %v1336_v56 = vadd.f32 %v1304_v27, %v1236_v42  ;;  %v856_v36 = vadd.f32 %v2806_v32, %v3196_v41  ;;  %v1105_v57 = vmul.f32 %v3310_v0, %v3227_v16  ;;  %v2809_v12 = vpop.f32.mrb[28].mxu0  ;;  %v1605_v63 = vmul.f32 %v3381_v15, %v3237_v24 }
 0x11f   : > { %v2007_v48 = vmax.f32 %v1975_v43, 0.0  ;;  %v1737_v58 = vadd.f32 %v1705_v29, %v1636_v8  ;;  %996 = vst.msk [vmem:[#allocation2 + $0x188] sm:$0xff] %vm971_vm2, %v959_v50  ;;  %v1706_v49 = vmul.f32 %v3239_v25, %v3421_v60  ;;  %v1205_v53 = vmul.f32 %v3337_v45, %v3221_v10  ;;  %v3442_v1 = vpop.f32.mrb[29].mxu0  ;;  %v3471_v43 = vld [vmem:[#allocation2 + $0xa9] sm:$0xff] }
 0x120   : > { %v1437_v3 = vadd.f32 %v1405_v44, %v1336_v56  ;;  %v1806_v0 = vmul.f32 %v3242_v33, %v3428_v52  ;;  %v926_v4 = vmax.f32 %v856_v36, 0.0  ;;  %v1305_v6 = vmul.f32 %v3345_v55, %v3229_v17 }
 0x121   : > { %v2039_v2 = vmin.f32 %v2007_v48, 6.0  ;;  %v1837_v5 = vadd.f32 %v1805_v35, %v1737_v58  ;;  %v1237_v59 = vadd.f32 %v1205_v53, %v1105_v57  ;;  %v1406_v62 = vmul.f32 %v3394_v18, %v3232_v20 }
 0x122   : > { %v1537_v45 = vadd.f32 %v1505_v51, %v1437_v3  ;;  %v1906_v13 = vmul.f32 %v3257_v54, %v3438_v61  ;;  %v962_v21 = vmin.f32 %v926_v4, 6.0  ;;  %v1506_v22 = vmul.f32 %v3398_v7, %v3235_v23  ;;  %v3459_v28 = vpop.f32.mrb[30].mxu0  ;;  %v3492_v4 = vld [vmem:[#allocation2 + $0xaf] sm:$0xff] }
 0x123   : > { %2827 = vmatmul.mubr.msk.f32.gmra.mrb[4].mxu1 %vm971_vm2, %v2039_v2  ;;  %v1937_v55 = vadd.f32 %v1905_v47, %v1837_v5  ;;  %v1337_v29 = vadd.f32 %v1305_v6, %v1237_v59  ;;  %v851_v31 = vadd.f32 %v3196_v41, %v850_v40  ;;  %v1106_v32 = vmul.f32 %v3359_v19, %v3227_v16  ;;  %v3464_v34 = vpop.f32.mrb[31].mxu0 }
 0x124   : > { %v1637_v38 = vadd.f32 %v1605_v63, %v1537_v45  ;;  %999 = vst.msk [vmem:[#allocation2 + $0x1b0] sm:$0xff] %vm971_vm2, %v962_v21  ;;  %v1606_v35 = vmul.f32 %v3410_v30, %v3237_v24  ;;  %v1707_v39 = vmul.f32 %v3239_v25, %v3450_v11  ;;  %v1206_v42 = vmul.f32 %v3373_v46, %v3221_v10  ;;  %v3500_v45 = vld [vmem:[#allocation2 + $0xb0] sm:$0xff] }
 0x125   : > { %v1976_v40 = vadd.f32 %v3322_v9, %v1937_v55  ;;  %v1438_v27 = vadd.f32 %v1406_v62, %v1337_v29  ;;  %v1807_v19 = vmul.f32 %v3242_v33, %v3457_v26  ;;  %v925_v44 = vmax.f32 %v851_v31, 0.0 }
 0x126   : > { %v1738_v8 = vadd.f32 %v1706_v49, %v1637_v38  ;;  %v1238_v47 = vadd.f32 %v1206_v42, %v1106_v32  ;;  %v1306_v50 = vmul.f32 %v3381_v15, %v3229_v17  ;;  %v1407_v51 = vmul.f32 %v3421_v60, %v3232_v20  ;;  %v3482_v48 = vpop.f32.mrb[32].mxu0 }
 0x127   : > { %v2008_v56 = vmax.f32 %v1976_v40, 0.0  ;;  %v1538_v36 = vadd.f32 %v1506_v22, %v1438_v27  ;;  %v1907_v46 = vmul.f32 %v3257_v54, %v3471_v43  ;;  %v961_v57 = vmin.f32 %v925_v44, 6.0  ;;  %v3486_v58 = vpop.f32.mrb[33].mxu0 }
 0x128   : > { %v1838_v63 = vadd.f32 %v1806_v0, %v1738_v8  ;;  %v1338_v53 = vadd.f32 %v1306_v50, %v1238_v47  ;;  %v1507_v49 = vmul.f32 %v3428_v52, %v3235_v23  ;;  %v866_v15 = vadd.f32 %v2809_v12, %v3196_v41  ;;  %v3519_v8 = vld [vmem:[#allocation2 + $0xb1] sm:$0xff] }
 0x129   : > { %v2040_v2 = vmin.f32 %v2008_v56, 6.0  ;;  %v1638_v3 = vadd.f32 %v1606_v35, %v1538_v36  ;;  %998 = vst.msk [vmem:[#allocation2 + $0x1a8] sm:$0xff] %vm971_vm2, %v961_v57  ;;  %v1107_v5 = vmul.f32 %v3394_v18, %v3227_v16  ;;  %v1207_v59 = vmul.f32 %v3398_v7, %v3221_v10  ;;  %v3525_v36 = vld [vmem:[#allocation2 + $0xc7] sm:$0xff] }
 0x12a   : > { %v1938_v6 = vadd.f32 %v1906_v13, %v1838_v63  ;;  %v1439_v0 = vadd.f32 %v1407_v51, %v1338_v53  ;;  %v1607_v62 = vmul.f32 %v3438_v61, %v3237_v24  ;;  %v928_v12 = vmax.f32 %v866_v15, 0.0  ;;  %v3530_v53 = vld [vmem:[#allocation2 + $0xc8] sm:$0xff] }
 0x12b   : > { %2829 = vmatprep.mubr.msk.f32.mxu1 %vm971_vm2, %v2040_v2  ;;  %v1739_v21 = vadd.f32 %v1707_v39, %v1638_v3  ;;  %v1239_v22 = vadd.f32 %v1207_v59, %v1107_v5  ;;  %v1307_v55 = vmul.f32 %v3410_v30, %v3229_v17  ;;  %v1408_v18 = vmul.f32 %v3450_v11, %v3232_v20 }
 0x12c   : > { %v1977_v7 = vadd.f32 %v3322_v9, %v1938_v6  ;;  %v1539_v13 = vadd.f32 %v1507_v49, %v1439_v0  ;;  %v1708_v29 = vmul.f32 %v3239_v25, %v3492_v4  ;;  %v964_v31 = vmin.f32 %v928_v12, 6.0  ;;  %v3540_v6 = vld [vmem:[#allocation2 + $0xc9] sm:$0xff] }
 0x12d   : > { %v1839_v32 = vadd.f32 %v1807_v19, %v1739_v21  ;;  %v1808_v38 = vmul.f32 %v3242_v33, %v3500_v45  ;;  %v1339_v35 = vadd.f32 %v1307_v55, %v1239_v22  ;;  %v1508_v39 = vmul.f32 %v3457_v26, %v3235_v23 }
 0x12e   : > { %v2009_v42 = vmax.f32 %v1977_v7, 0.0  ;;  %v1639_v30 = vadd.f32 %v1607_v62, %v1539_v13  ;;  %1001 = vst.msk [vmem:[#allocation2 + $0x1d0] sm:$0xff] %vm971_vm2, %v964_v31  ;;  %v1608_v40 = vmul.f32 %v3471_v43, %v3237_v24  ;;  %v861_v27 = vadd.f32 %v3196_v41, %v3442_v1 }
 0x12f   : > { %v1939_v44 = vadd.f32 %v1907_v46, %v1839_v32  ;;  %v1440_v19 = vadd.f32 %v1408_v18, %v1339_v35  ;;  %v1108_v47 = vmul.f32 %v3421_v60, %v3227_v16  ;;  %v1208_v50 = vmul.f32 %v3428_v52, %v3221_v10  ;;  %v3554_v32 = vld [vmem:[#allocation2 + $0xcf] sm:$0xff] }
 0x130   : > { %v2041_v51 = vmin.f32 %v2009_v42, 6.0  ;;  %v1740_v56 = vadd.f32 %v1708_v29, %v1639_v30  ;;  %v927_v57 = vmax.f32 %v861_v27, 0.0  ;;  %v1308_v63 = vmul.f32 %v3438_v61, %v3229_v17  ;;  %v3563_v30 = vld [vmem:[#allocation2 + $0xd1] sm:$0xff] }
 0x131   : > { %v1978_v1 = vadd.f32 %v3322_v9, %v1939_v44  ;;  %v1540_v46 = vadd.f32 %v1508_v39, %v1440_v19  ;;  %v1240_v49 = vadd.f32 %v1208_v50, %v1108_v47  ;;  %v1409_v60 = vmul.f32 %v3492_v4, %v3232_v20 }
 0x132   : > { %2830 = vmatmul.mubr.msk.f32.gmra.mrb[6].mxu1 %vm971_vm2, %v2041_v51  ;;  %v1840_v52 = vadd.f32 %v1808_v38, %v1740_v56  ;;  %v1908_v15 = vmul.f32 %v3257_v54, %v3519_v8  ;;  %v963_v2 = vmin.f32 %v927_v57, 6.0  ;;  %v933_v3 = vmax.f32 %v3377_v14, 0.0  ;;  %v3556_v38 = vld [vmem:[#allocation2 + $0xd0] sm:$0xff] }
 0x133   : > { %v2010_v5 = vmax.f32 %v1978_v1, 0.0  ;;  %v1640_v61 = vadd.f32 %v1608_v40, %v1540_v46  ;;  %v1709_v59 = vmul.f32 %v3239_v25, %v3525_v36  ;;  %v1340_v0 = vadd.f32 %v1308_v63, %v1240_v49 }
 0x134   : > { %v1940_v62 = vadd.f32 %v1908_v15, %v1840_v52  ;;  %v1809_v12 = vmul.f32 %v3242_v33, %v3530_v53  ;;  %1000 = vst.msk [vmem:[#allocation2 + $0x1c8] sm:$0xff] %vm971_vm2, %v963_v2  ;;  %v1509_v21 = vmul.f32 %v3500_v45, %v3235_v23  ;;  %v876_v22 = vadd.f32 %v3459_v28, %v3196_v41 }
 0x135   : > { %v2042_v55 = vmin.f32 %v2010_v5, 6.0  ;;  %v1741_v18 = vadd.f32 %v1709_v59, %v1640_v61  ;;  %v1441_v7 = vadd.f32 %v1409_v60, %v1340_v0  ;;  %v1109_v13 = vmul.f32 %v3450_v11, %v3227_v16  ;;  %v3579_v60 = vld [vmem:[#allocation2 + $0xe7] sm:$0xff] }
 0x136   : > { %v1979_v29 = vadd.f32 %v3322_v9, %v1940_v62  ;;  %v1909_v31 = vmul.f32 %v3257_v54, %v3540_v6  ;;  %v930_v35 = vmax.f32 %v876_v22, 0.0  ;;  %v1209_v39 = vmul.f32 %v3457_v26, %v3221_v10  ;;  %v3588_v61 = vld [vmem:[#allocation2 + $0xe8] sm:$0xff] }
 0x137   : > { %2832 = vmatprep.mubr.msk.f32.mxu1 %vm971_vm2, %v2042_v55  ;;  %v1841_v28 = vadd.f32 %v1809_v12, %v1741_v18  ;;  %v1541_v42 = vadd.f32 %v1509_v21, %v1441_v7  ;;  %v1609_v11 = vmul.f32 %v3519_v8, %v3237_v24  ;;  %v1309_v40 = vmul.f32 %v3471_v43, %v3229_v17  ;;  %v3592_v12 = vld [vmem:[#allocation2 + $0xe9] sm:$0xff] }
 0x138   : > { %v2011_v27 = vmax.f32 %v1979_v29, 0.0  ;;  %v966_v44 = vmin.f32 %v930_v35, 6.0  ;;  %v1241_v19 = vadd.f32 %v1209_v39, %v1109_v13  ;;  %v1410_v47 = vmul.f32 %v3525_v36, %v3232_v20 }
 0x139   : > { %v1941_v50 = vadd.f32 %v1909_v31, %v1841_v28  ;;  %v1641_v26 = vadd.f32 %v1609_v11, %v1541_v42  ;;  %v1710_v51 = vmul.f32 %v3239_v25, %v3554_v32  ;;  %v1810_v56 = vmul.f32 %v3242_v33, %v3556_v38 }
 0x13a   : > { %v2043_v57 = vmin.f32 %v2011_v27, 6.0  ;;  %v1910_v63 = vmul.f32 %v3257_v54, %v3563_v30  ;;  %1003 = vst.msk [vmem:[#allocation2 + $0x1f0] sm:$0xff] %vm971_vm2, %v966_v44  ;;  %v1341_v43 = vadd.f32 %v1309_v40, %v1241_v19  ;;  %v871_v1 = vadd.f32 %v3196_v41, %v3464_v34  ;;  %v3613_v27 = vld [vmem:[#allocation2 + $0xef] sm:$0xff] }
 0x13b   : > { %v1980_v46 = vadd.f32 %v3322_v9, %v1941_v50  ;;  %v1742_v49 = vadd.f32 %v1710_v51, %v1641_v26  ;;  %v1110_v52 = vmul.f32 %v3492_v4, %v3227_v16  ;;  %v1210_v15 = vmul.f32 %v3500_v45, %v3221_v10  ;;  %v3615_v44 = vld [vmem:[#allocation2 + $0xf0] sm:$0xff] }
 0x13c   : > { %2833 = vmatmul.mubr.msk.f32.gmra.mrb[8].mxu1 %vm971_vm2, %v2043_v57  ;;  %v1442_v2 = vadd.f32 %v1410_v47, %v1341_v43  ;;  %v1510_v5 = vmul.f32 %v3530_v53, %v3235_v23  ;;  %v929_v34 = vmax.f32 %v871_v1, 0.0  ;;  %v1310_v59 = vmul.f32 %v3519_v8, %v3229_v17 }
 0x13d   : > { %v2012_v0 = vmax.f32 %v1980_v46, 0.0  ;;  %v1842_v62 = vadd.f32 %v1810_v56, %v1742_v49  ;;  %v1242_v4 = vadd.f32 %v1210_v15, %v1110_v52  ;;  %v1411_v45 = vmul.f32 %v3554_v32, %v3232_v20 }
 0x13e   : > { %v1542_v21 = vadd.f32 %v1510_v5, %v1442_v2  ;;  %v1610_v22 = vmul.f32 %v3540_v6, %v3237_v24  ;;  %v1711_v55 = vmul.f32 %v3239_v25, %v3579_v60  ;;  %v965_v18 = vmin.f32 %v929_v34, 6.0  ;;  %v3634_v5 = vld [vmem:[#allocation2 + $0x107] sm:$0xff] }
 0x13f   : > { %v2044_v7 = vmin.f32 %v2012_v0, 6.0  ;;  %v1942_v13 = vadd.f32 %v1910_v63, %v1842_v62  ;;  %v1811_v8 = vmul.f32 %v3242_v33, %v3588_v61  ;;  %v1342_v29 = vadd.f32 %v1310_v59, %v1242_v4 }
 0x140   : > { %v1642_v31 = vadd.f32 %v1610_v22, %v1542_v21  ;;  %v1911_v35 = vmul.f32 %v3257_v54, %v3592_v12  ;;  %1002 = vst.msk [vmem:[#allocation2 + $0x1e8] sm:$0xff] %vm971_vm2, %v965_v18  ;;  %v886_v39 = vadd.f32 %v3482_v48, %v3196_v41  ;;  %v1111_v28 = vmul.f32 %v3525_v36, %v3227_v16  ;;  %v3621_v36 = vld [vmem:[#allocation2 + $0xf1] sm:$0xff]  ;;  %v3645_v21 = vld [vmem:[#allocation2 + $0x108] sm:$0xff] }
 0x141   : > { %2835 = vmatprep.mubr.msk.f32.mxu1 %vm971_vm2, %v2044_v7  ;;  %v1981_v42 = vadd.f32 %v3322_v9, %v1942_v13  ;;  %v1443_v11 = vadd.f32 %v1411_v45, %v1342_v29  ;;  %v1511_v40 = vmul.f32 %v3556_v38, %v3235_v23  ;;  %v1211_v19 = vmul.f32 %v3530_v53, %v3221_v10 }
 0x142   : > { %v1743_v47 = vadd.f32 %v1711_v55, %v1642_v31  ;;  %v1611_v48 = vmul.f32 %v3563_v30, %v3237_v24  ;;  %v932_v50 = vmax.f32 %v886_v39, 0.0  ;;  %v1311_v26 = vmul.f32 %v3540_v6, %v3229_v17  ;;  %v3660_v39 = vld [vmem:[#allocation2 + $0x10f] sm:$0xff] }
 0x143   : > { %v2013_v51 = vmax.f32 %v1981_v42, 0.0  ;;  %v1543_v56 = vadd.f32 %v1511_v40, %v1443_v11  ;;  %v1243_v57 = vadd.f32 %v1211_v19, %v1111_v28  ;;  %v1412_v63 = vmul.f32 %v3579_v60, %v3232_v20 }
 0x144   : > { %v1843_v43 = vadd.f32 %v1811_v8, %v1743_v47  ;;  %v1712_v53 = vmul.f32 %v3239_v25, %v3613_v27  ;;  %v1812_v1 = vmul.f32 %v3242_v33, %v3615_v44  ;;  %v968_v46 = vmin.f32 %v932_v50, 6.0  ;;  %v3669_v50 = vld [vmem:[#allocation2 + $0x110] sm:$0xff] }
 0x145   : > { %v2045_v49 = vmin.f32 %v2013_v51, 6.0  ;;  %v1643_v52 = vadd.f32 %v1611_v48, %v1543_v56  ;;  %v1912_v15 = vmul.f32 %v3257_v54, %v3621_v36  ;;  %v1343_v6 = vadd.f32 %v1311_v26, %v1243_v57  ;;  %v3671_v26 = vld [vmem:[#allocation2 + $0x111] sm:$0xff] }
 0x146   : > { %v1943_v2 = vadd.f32 %v1911_v35, %v1843_v43  ;;  %1005 = vst.msk [vmem:[#allocation2 + $0x210] sm:$0xff] %vm971_vm2, %v968_v46  ;;  %v881_v34 = vadd.f32 %v3196_v41, %v3486_v58  ;;  %v1112_v59 = vmul.f32 %v3554_v32, %v3227_v16  ;;  %v1212_v0 = vmul.f32 %v3556_v38, %v3221_v10  ;;  %v3650_v58 = vld [vmem:[#allocation2 + $0x109] sm:$0xff] }
 0x147   : > { %2836 = vmatmul.mubr.msk.f32.gmra.mrb[10].mxu1 %vm971_vm2, %v2045_v49  ;;  %v1744_v62 = vadd.f32 %v1712_v53, %v1643_v52  ;;  %v1444_v4 = vadd.f32 %v1412_v63, %v1343_v6  ;;  %v1512_v45 = vmul.f32 %v3588_v61, %v3235_v23  ;;  %v1312_v22 = vmul.f32 %v3563_v30, %v3229_v17  ;;  %v3689_v6 = vld [vmem:[#allocation2 + $0x127] sm:$0xff] }
 0x148   : > { %v1982_v41 = vadd.f32 %v3322_v9, %v1943_v2  ;;  %v931_v32 = vmax.f32 %v881_v34, 0.0  ;;  %v1244_v55 = vadd.f32 %v1212_v0, %v1112_v59  ;;  %v1413_v38 = vmul.f32 %v3613_v27, %v3232_v20 }
 0x149   : > { %v1844_v18 = vadd.f32 %v1812_v1, %v1744_v62  ;;  %v1544_v7 = vadd.f32 %v1512_v45, %v1444_v4  ;;  %v1612_v13 = vmul.f32 %v3592_v12, %v3237_v24  ;;  %v1713_v8 = vmul.f32 %v3239_v25, %v3634_v5  ;;  %v3697_v45 = vld [vmem:[#allocation2 + $0x128] sm:$0xff] }
 0x14a   : > { %v2014_v29 = vmax.f32 %v1982_v41, 0.0  ;;  %v1813_v30 = vmul.f32 %v3242_v33, %v3645_v21  ;;  %v967_v31 = vmin.f32 %v931_v32, 6.0  ;;  %v1344_v35 = vadd.f32 %v1312_v22, %v1244_v55  ;;  %v3699_v22 = vld [vmem:[#allocation2 + $0x129] sm:$0xff] }
 0x14b   : > { %v1944_v28 = vadd.f32 %v1912_v15, %v1844_v18  ;;  %v1644_v42 = vadd.f32 %v1612_v13, %v1544_v7  ;;  %v1913_v11 = vmul.f32 %v3257_v54, %v3650_v58  ;;  %v1113_v40 = vmul.f32 %v3579_v60, %v3227_v16 }
 0x14c   : > { %v2046_v19 = vmin.f32 %v2014_v29, 6.0  ;;  %1004 = vst.msk [vmem:[#allocation2 + $0x208] sm:$0xff] %vm971_vm2, %v967_v31  ;;  %v1445_v47 = vadd.f32 %v1413_v38, %v1344_v35  ;;  %v1513_v48 = vmul.f32 %v3615_v44, %v3235_v23  ;;  %v1213_v51 = vmul.f32 %v3588_v61, %v3221_v10  ;;  %v3720_v35 = vld [vmem:[#allocation2 + $0x12f] sm:$0xff] }
 0x14d   : > { %v1983_v56 = vadd.f32 %v3322_v9, %v1944_v28  ;;  %v1745_v57 = vadd.f32 %v1713_v8, %v1644_v42  ;;  %v1613_v60 = vmul.f32 %v3621_v36, %v3237_v24  ;;  %v1714_v63 = vmul.f32 %v3239_v25, %v3660_v39 }
 0x14e   : > { %2838 = vmatprep.mubr.msk.f32.mxu1 %vm971_vm2, %v2046_v19  ;;  %v1545_v43 = vadd.f32 %v1513_v48, %v1445_v47  ;;  %v1245_v53 = vadd.f32 %v1213_v51, %v1113_v40  ;;  %v1313_v1 = vmul.f32 %v3592_v12, %v3229_v17  ;;  %v1414_v46 = vmul.f32 %v3634_v5, %v3232_v20  ;;  %v3728_v40 = vld [vmem:[#allocation2 + $0x130] sm:$0xff] }
 0x14f   : > { %v2015_v61 = vmax.f32 %v1983_v56, 0.0  ;;  %v1845_v49 = vadd.f32 %v1813_v30, %v1745_v57  ;;  %v1814_v52 = vmul.f32 %v3242_v33, %v3669_v50  ;;  %v1914_v15 = vmul.f32 %v3257_v54, %v3671_v26  ;;  %v3730_v19 = vld [vmem:[#allocation2 + $0x131] sm:$0xff] }
 0x150   : > { %v1645_v2 = vadd.f32 %v1613_v60, %v1545_v43  ;;  %v1345_v34 = vadd.f32 %v1313_v1, %v1245_v53  ;;  %v969_v59 = vmin.f32 %v933_v3, 6.0  ;;  %v1114_v12 = vmul.f32 %v3613_v27, %v3227_v16 }
 0x151   : > { %v2047_v0 = vmin.f32 %v2015_v61, 6.0  ;;  %v1945_v62 = vadd.f32 %v1913_v11, %v1845_v49  ;;  %v1514_v4 = vmul.f32 %v3645_v21, %v3235_v23  ;;  %v1214_v41 = vmul.f32 %v3615_v44, %v3221_v10  ;;  %v3746_v49 = vld [vmem:[#allocation2 + $0x147] sm:$0xff] }
 0x152   : > { %v1746_v32 = vadd.f32 %v1714_v63, %v1645_v2  ;;  %v1446_v55 = vadd.f32 %v1414_v46, %v1345_v34  ;;  %v1614_v14 = vmul.f32 %v3650_v58, %v3237_v24  ;;  %v1715_v3 = vmul.f32 %v3239_v25, %v3689_v6  ;;  %1006 = vst.msk [vmem:[#allocation2 + $0x228] sm:$0xff] %vm971_vm2, %v969_v59 }
 0x153   : > { %2839 = vmatmul.mubr.msk.f32.gmra.mrb[12].mxu1 %vm971_vm2, %v2047_v0  ;;  %v1984_v27 = vadd.f32 %v3322_v9, %v1945_v62  ;;  %1058 = vst.msk [vmem:[#allocation2 + $0x228] sm:$0xff] %vm971_vm2, %v2959_v37  ;;  %v1246_v38 = vadd.f32 %v1214_v41, %v1114_v12  ;;  %v1314_v44 = vmul.f32 %v3621_v36, %v3229_v17  ;;  %v3754_v12 = vld [vmem:[#allocation2 + $0x148] sm:$0xff] }
 0x154   : > { %v1415_v18 = vmul.f32 %v3660_v39, %v3232_v20  ;;  %v1846_v7 = vadd.f32 %v1814_v52, %v1746_v32  ;;  %v1546_v13 = vadd.f32 %v1514_v4, %v1446_v55  ;;  %v1815_v8 = vmul.f32 %v3242_v33, %v3697_v45  ;;  %v3756_v0 = vld [vmem:[#allocation2 + $0x149] sm:$0xff] }
 0x155   : > { %v1915_v29 = vmul.f32 %v3257_v54, %v3699_v22  ;;  %v2016_v30 = vmax.f32 %v1984_v27, 0.0  ;;  %v1346_v31 = vadd.f32 %v1314_v44, %v1246_v38  ;;  %v1115_v37 = vmul.f32 %v3634_v5, %v3227_v16 }
 0x156   : > { %v1215_v36 = vmul.f32 %v3645_v21, %v3221_v10  ;;  %v1946_v28 = vadd.f32 %v1914_v15, %v1846_v7  ;;  %v1646_v42 = vadd.f32 %v1614_v14, %v1546_v13  ;;  %v1515_v11 = vmul.f32 %v3669_v50, %v3235_v23  ;;  %v3772_v13 = vld [vmem:[#allocation2 + $0x14f] sm:$0xff] }
 0x157   : > { %v1315_v47 = vmul.f32 %v3650_v58, %v3229_v17  ;;  %v2048_v48 = vmin.f32 %v2016_v30, 6.0  ;;  %v1447_v51 = vadd.f32 %v1415_v18, %v1346_v31  ;;  %v1416_v5 = vmul.f32 %v3689_v6, %v3232_v20 }
 0x158   : > { %v1247_v56 = vadd.f32 %v1215_v36, %v1115_v37  ;;  %v1985_v21 = vadd.f32 %v3322_v9, %v1946_v28  ;;  %v1747_v57 = vadd.f32 %v1715_v3, %v1646_v42  ;;  %v1615_v60 = vmul.f32 %v3671_v26, %v3237_v24  ;;  %v3780_v36 = vld [vmem:[#allocation2 + $0x150] sm:$0xff] }
 0x159   : > { %v1716_v63 = vmul.f32 %v3239_v25, %v3720_v35  ;;  %2841 = vmatprep.mubr.msk.f32.mxu1 %vm971_vm2, %v2048_v48  ;;  %v1547_v43 = vadd.f32 %v1515_v11, %v1447_v51  ;;  %v1816_v58 = vmul.f32 %v3242_v33, %v3728_v40  ;;  %v1916_v53 = vmul.f32 %v3257_v54, %v3730_v19 }
 0x15a   : > { %v1347_v1 = vadd.f32 %v1315_v47, %v1247_v56  ;;  %v2017_v46 = vmax.f32 %v1985_v21, 0.0  ;;  %v1847_v61 = vadd.f32 %v1815_v8, %v1747_v57  ;;  %v1116_v52 = vmul.f32 %v3660_v39, %v3227_v16  ;;  %v3784_v47 = vld [vmem:[#allocation2 + $0x151] sm:$0xff] }
 0x15b   : > { %v1216_v15 = vmul.f32 %v3669_v50, %v3221_v10  ;;  %v1647_v2 = vadd.f32 %v1615_v60, %v1547_v43  ;;  %v1516_v59 = vmul.f32 %v3697_v45, %v3235_v23  ;;  %v1316_v62 = vmul.f32 %v3671_v26, %v3229_v17 }
 0x15c   : > { %v1448_v34 = vadd.f32 %v1416_v5, %v1347_v1  ;;  %v2049_v4 = vmin.f32 %v2017_v46, 6.0  ;;  %v1947_v41 = vadd.f32 %v1915_v29, %v1847_v61  ;;  %v1417_v39 = vmul.f32 %v3720_v35, %v3232_v20 }
 0x15d   : > { %v1248_v32 = vadd.f32 %v1216_v15, %v1116_v52  ;;  %v1748_v55 = vadd.f32 %v1716_v63, %v1647_v2  ;;  %v1616_v14 = vmul.f32 %v3699_v22, %v3237_v24  ;;  %v1717_v3 = vmul.f32 %v3239_v25, %v3746_v49  ;;  %v3804_v15 = vld [vmem:[#allocation2 + $0x167] sm:$0xff] }
 0x15e   : > { %v1548_v50 = vadd.f32 %v1516_v59, %v1448_v34  ;;  %2842 = vmatmul.mubr.msk.f32.gmra.mrb[14].mxu1 %vm971_vm2, %v2049_v4  ;;  %v1986_v27 = vadd.f32 %v3322_v9, %v1947_v41  ;;  %v1817_v26 = vmul.f32 %v3242_v33, %v3754_v12  ;;  %v1917_v38 = vmul.f32 %v3257_v54, %v3756_v0  ;;  %v3806_v2 = vld [vmem:[#allocation2 + $0x168] sm:$0xff] }
 0x15f   : > { %v1348_v44 = vadd.f32 %v1316_v62, %v1248_v32  ;;  %v1848_v18 = vadd.f32 %v1816_v58, %v1748_v55  ;;  %v1117_v8 = vmul.f32 %v3689_v6, %v3227_v16  ;;  %v1217_v29 = vmul.f32 %v3697_v45, %v3221_v10  ;;  %v3808_v59 = vld [vmem:[#allocation2 + $0x169] sm:$0xff] }
 0x160   : > { %v1648_v7 = vadd.f32 %v1616_v14, %v1548_v50  ;;  %v2018_v30 = vmax.f32 %v1986_v27, 0.0  ;;  %v1517_v37 = vmul.f32 %v3728_v40, %v3235_v23  ;;  %v1317_v28 = vmul.f32 %v3699_v22, %v3229_v17 }
 0x161   : > { %v1449_v31 = vadd.f32 %v1417_v39, %v1348_v44  ;;  %v1948_v42 = vadd.f32 %v1916_v53, %v1848_v18  ;;  %v1249_v48 = vadd.f32 %v1217_v29, %v1117_v8  ;;  %v1418_v6 = vmul.f32 %v3746_v49, %v3232_v20  ;;  %v3830_v8 = vld [vmem:[#allocation2 + $0x170] sm:$0xff] }
 0x162   : > { %v1749_v11 = vadd.f32 %v1717_v3, %v1648_v7  ;;  %v2050_v51 = vmin.f32 %v2018_v30, 6.0  ;;  %v1617_v56 = vmul.f32 %v3730_v19, %v3237_v24  ;;  %v1718_v5 = vmul.f32 %v3239_v25, %v3772_v13  ;;  %v3828_v7 = vld [vmem:[#allocation2 + $0x16f] sm:$0xff] }
 0x163   : > { %v1549_v45 = vadd.f32 %v1517_v37, %v1449_v31  ;;  %v1987_v21 = vadd.f32 %v3322_v9, %v1948_v42  ;;  %v1818_v22 = vmul.f32 %v3242_v33, %v3780_v36  ;;  %v1349_v60 = vadd.f32 %v1317_v28, %v1249_v48  ;;  %v3832_v29 = vld [vmem:[#allocation2 + $0x171] sm:$0xff]  ;;  %v3843_v42 = vld [vmem:[%s4276_s6] ss:$0 sm:$0xff] }
 0x164   : > { %v1849_v57 = vadd.f32 %v1817_v26, %v1749_v11  ;;  %2844 = vmatprep.mubr.msk.f32.mxu1 %vm971_vm2, %v2050_v51  ;;  %v1918_v43 = vmul.f32 %v3257_v54, %v3784_v47  ;;  %v1118_v58 = vmul.f32 %v3720_v35, %v3227_v16  ;;  %v1218_v53 = vmul.f32 %v3728_v40, %v3221_v10 }
 0x165   : > { %v1649_v63 = vadd.f32 %v1617_v56, %v1549_v45  ;;  %v2019_v1 = vmax.f32 %v1987_v21, 0.0  ;;  %v1450_v61 = vadd.f32 %v1418_v6, %v1349_v60  ;;  %v1518_v52 = vmul.f32 %v3754_v12, %v3235_v23 }
 0x166   : > { %v1949_v46 = vadd.f32 %v1917_v38, %v1849_v57  ;;  %v1250_v62 = vadd.f32 %v1218_v53, %v1118_v58  ;;  %v1318_v35 = vmul.f32 %v3730_v19, %v3229_v17  ;;  %v1419_v40 = vmul.f32 %v3772_v13, %v3232_v20  ;;  %v3863_v53 = vld [vmem:[#allocation2 + $0x188] sm:$0xff] }
 0x167   : > { %v1750_v34 = vadd.f32 %v1718_v5, %v1649_v63  ;;  %v2051_v4 = vmin.f32 %v2019_v1, 6.0  ;;  %v1550_v32 = vadd.f32 %v1518_v52, %v1450_v61  ;;  %v1618_v39 = vmul.f32 %v3756_v0, %v3237_v24  ;;  %v3855_v5 = vld [vmem:[#allocation2 + $0x187] sm:$0xff] }
 0x168   : > { %v1988_v41 = vadd.f32 %v3322_v9, %v1949_v46  ;;  %v1719_v50 = vmul.f32 %v3239_v25, %v3804_v15  ;;  %v1819_v14 = vmul.f32 %v3242_v33, %v3806_v2  ;;  %v1350_v3 = vadd.f32 %v1318_v35, %v1250_v62  ;;  %v3865_v1 = vld [vmem:[#allocation2 + $0x189] sm:$0xff] }
 0x169   : > { %v1850_v55 = vadd.f32 %v1818_v22, %v1750_v34  ;;  %2845 = vmatmul.mubr.msk.f32.gmra.mrb[16].mxu1 %vm971_vm2, %v2051_v4  ;;  %v1650_v27 = vadd.f32 %v1618_v39, %v1550_v32  ;;  %v1919_v26 = vmul.f32 %v3257_v54, %v3808_v59  ;;  %v1119_v9 = vmul.f32 %v3746_v49, %v3227_v16 }
 0x16a   : > { %v2020_v19 = vmax.f32 %v1988_v41, 0.0  ;;  %v1451_v44 = vadd.f32 %v1419_v40, %v1350_v3  ;;  %v1519_v18 = vmul.f32 %v3780_v36, %v3235_v23  ;;  %v1219_v30 = vmul.f32 %v3754_v12, %v3221_v10 }
 0x16b   : > { %v1950_v38 = vadd.f32 %v1918_v43, %v1850_v55  ;;  %v1751_v37 = vadd.f32 %v1719_v50, %v1650_v27  ;;  %v1619_v28 = vmul.f32 %v3784_v47, %v3237_v24  ;;  %v1319_v49 = vmul.f32 %v3756_v0, %v3229_v17 }
 0x16c   : > { %v2052_v31 = vmin.f32 %v2020_v19, 6.0  ;;  %v1551_v48 = vadd.f32 %v1519_v18, %v1451_v44  ;;  %v1251_v6 = vadd.f32 %v1219_v30, %v1119_v9  ;;  %v1420_v12 = vmul.f32 %v3804_v15, %v3232_v20  ;;  %v3889_v9 = vld [vmem:[#allocation2 + $0x190] sm:$0xff] }
 0x16d   : > { %v1989_v11 = vadd.f32 %v3843_v42, %v1950_v38  ;;  %v1851_v51 = vadd.f32 %v1819_v14, %v1751_v37  ;;  %v1720_v45 = vmul.f32 %v3239_v25, %v3828_v7  ;;  %v1820_v0 = vmul.f32 %v3242_v33, %v3830_v8  ;;  %v3881_v14 = vld [vmem:[#allocation2 + $0x18f] sm:$0xff] }
 0x16e   : > { %2847 = vmatprep.mubr.msk.f32.mxu1 %vm971_vm2, %v2052_v31  ;;  %v1920_v56 = vmul.f32 %v3257_v54, %v3832_v29  ;;  %v1651_v57 = vadd.f32 %v1619_v28, %v1551_v48  ;;  %v1351_v22 = vadd.f32 %v1319_v49, %v1251_v6  ;;  %v1120_v60 = vmul.f32 %v3772_v13, %v3227_v16  ;;  %v3891_v38 = vld [vmem:[#allocation2 + $0x191] sm:$0xff] }
 0x16f   : > { %v2021_v21 = vmax.f32 %v1989_v11, 0.0  ;;  %v1951_v63 = vadd.f32 %v1919_v26, %v1851_v51  ;;  %v1520_v43 = vmul.f32 %v3806_v2, %v3235_v23  ;;  %v1620_v58 = vmul.f32 %v3808_v59, %v3237_v24 }
 0x170   : > { %v1220_v46 = vmul.f32 %v3780_v36, %v3221_v10  ;;  %v1752_v52 = vadd.f32 %v1720_v45, %v1651_v57  ;;  %v1452_v34 = vadd.f32 %v1420_v12, %v1351_v22  ;;  %v1721_v13 = vmul.f32 %v3239_v25, %v3855_v5  ;;  %v3907_v45 = vld [vmem:[#allocation2 + $0x1a7] sm:$0xff] }
 0x171   : > { %v2053_v61 = vmin.f32 %v2021_v21, 6.0  ;;  %v1990_v62 = vadd.f32 %v3843_v42, %v1951_v63  ;;  %v1320_v40 = vmul.f32 %v3784_v47, %v3229_v17  ;;  %v1421_v4 = vmul.f32 %v3828_v7, %v3232_v20  ;;  %v3917_v63 = vld [vmem:[#allocation2 + $0x1a9] sm:$0xff] }
 0x172   : > { %v1252_v35 = vadd.f32 %v1220_v46, %v1120_v60  ;;  %v1852_v41 = vadd.f32 %v1820_v0, %v1752_v52  ;;  %v1552_v32 = vadd.f32 %v1520_v43, %v1452_v34  ;;  %v1821_v36 = vmul.f32 %v3242_v33, %v3863_v53  ;;  %v3915_v60 = vld [vmem:[#allocation2 + $0x1a8] sm:$0xff] }
 0x173   : > { %2848 = vmatmul.mubr.msk.f32.gmra.mrb[18].mxu1 %vm971_vm2, %v2053_v61  ;;  %v1921_v39 = vmul.f32 %v3257_v54, %v3865_v1  ;;  %v2022_v55 = vmax.f32 %v1990_v62, 0.0  ;;  %v1121_v47 = vmul.f32 %v3804_v15, %v3227_v16  ;;  %v1221_v3 = vmul.f32 %v3806_v2, %v3221_v10 }
 0x174   : > { %v1352_v50 = vadd.f32 %v1320_v40, %v1252_v35  ;;  %v1952_v19 = vadd.f32 %v1920_v56, %v1852_v41  ;;  %v1652_v27 = vadd.f32 %v1620_v58, %v1552_v32  ;;  %v1521_v26 = vmul.f32 %v3830_v8, %v3235_v23  ;;  %v3933_v32 = vld [vmem:[#allocation2 + $0x1af] sm:$0xff] }
 0x175   : > { %v1321_v44 = vmul.f32 %v3808_v59, %v3229_v17  ;;  %v2054_v18 = vmin.f32 %v2022_v55, 6.0  ;;  %v1253_v31 = vadd.f32 %v1221_v3, %v1121_v47  ;;  %v1422_v15 = vmul.f32 %v3855_v5, %v3232_v20  ;;  %v3941_v3 = vld [vmem:[#allocation2 + $0x1b0] sm:$0xff] }
 0x176   : > { %v1453_v30 = vadd.f32 %v1421_v4, %v1352_v50  ;;  %v1991_v2 = vadd.f32 %v3843_v42, %v1952_v19  ;;  %v1753_v37 = vadd.f32 %v1721_v13, %v1652_v27  ;;  %v1621_v28 = vmul.f32 %v3832_v29, %v3237_v24 }
 0x177   : > { %v1722_v49 = vmul.f32 %v3239_v25, %v3881_v14  ;;  %2850 = vmatprep.mubr.msk.f32.mxu1 %vm971_vm2, %v2054_v18  ;;  %v1822_v59 = vmul.f32 %v3242_v33, %v3889_v9  ;;  %v1922_v48 = vmul.f32 %v3257_v54, %v3891_v38  ;;  %v1353_v6 = vadd.f32 %v1321_v44, %v1253_v31  ;;  %v3945_v44 = vld [vmem:[#allocation2 + $0x1b1] sm:$0xff] }
 0x178   : > { %v1553_v11 = vadd.f32 %v1521_v26, %v1453_v30  ;;  %v2023_v12 = vmax.f32 %v1991_v2, 0.0  ;;  %v1853_v51 = vadd.f32 %v1821_v36, %v1753_v37  ;;  %v1122_v0 = vmul.f32 %v3828_v7, %v3227_v16 }
 0x179   : > { %v1222_v56 = vmul.f32 %v3830_v8, %v3221_v10  ;;  %v1454_v57 = vadd.f32 %v1422_v15, %v1353_v6  ;;  %v1522_v22 = vmul.f32 %v3863_v53, %v3235_v23  ;;  %v1322_v43 = vmul.f32 %v3832_v29, %v3229_v17 }
 0x17a   : > { %v1653_v21 = vadd.f32 %v1621_v28, %v1553_v11  ;;  %v2055_v58 = vmin.f32 %v2023_v12, 6.0  ;;  %v1953_v46 = vadd.f32 %v1921_v39, %v1853_v51  ;;  %v1423_v7 = vmul.f32 %v3881_v14, %v3232_v20 }
 0x17b   : > { %v1254_v61 = vadd.f32 %v1222_v56, %v1122_v0  ;;  %v1554_v8 = vadd.f32 %v1522_v22, %v1454_v57  ;;  %v1622_v34 = vmul.f32 %v3865_v1, %v3237_v24  ;;  %v1723_v13 = vmul.f32 %v3239_v25, %v3907_v45  ;;  %v3965_v56 = vld [vmem:[#allocation2 + $0x1c7] sm:$0xff] }
 0x17c   : > { %v1754_v52 = vadd.f32 %v1722_v49, %v1653_v21  ;;  %2851 = vmatmul.mubr.msk.f32.gmra.mrb[20].mxu1 %vm971_vm2, %v2055_v58  ;;  %v1992_v62 = vadd.f32 %v3843_v42, %v1953_v46  ;;  %v1823_v29 = vmul.f32 %v3242_v33, %v3915_v60  ;;  %v1923_v35 = vmul.f32 %v3257_v54, %v3917_v63  ;;  %v3967_v21 = vld [vmem:[#allocation2 + $0x1c8] sm:$0xff] }
 0x17d   : > { %v1354_v40 = vadd.f32 %v1322_v43, %v1254_v61  ;;  %v1654_v41 = vadd.f32 %v1622_v34, %v1554_v8  ;;  %v1123_v36 = vmul.f32 %v3855_v5, %v3227_v16  ;;  %v1223_v39 = vmul.f32 %v3863_v53, %v3221_v10  ;;  %v3969_v22 = vld [vmem:[#allocation2 + $0x1c9] sm:$0xff] }
 0x17e   : > { %v1854_v4 = vadd.f32 %v1822_v59, %v1754_v52  ;;  %v2024_v55 = vmax.f32 %v1992_v62, 0.0  ;;  %v1523_v47 = vmul.f32 %v3889_v9, %v3235_v23  ;;  %v1323_v19 = vmul.f32 %v3865_v1, %v3229_v17 }
 0x17f   : > { %v1455_v50 = vadd.f32 %v1423_v7, %v1354_v40  ;;  %v1755_v26 = vadd.f32 %v1723_v13, %v1654_v41  ;;  %v1255_v18 = vadd.f32 %v1223_v39, %v1123_v36  ;;  %v1424_v5 = vmul.f32 %v3907_v45, %v3232_v20  ;;  %v3989_v36 = vld [vmem:[#allocation2 + $0x1cf] sm:$0xff] }
 0x180   : > { %v1954_v27 = vadd.f32 %v1922_v48, %v1854_v4  ;;  %v2056_v30 = vmin.f32 %v2024_v55, 6.0  ;;  %v1623_v31 = vmul.f32 %v3891_v38, %v3237_v24  ;;  %v1724_v15 = vmul.f32 %v3239_v25, %v3933_v32  ;;  %v3991_v39 = vld [vmem:[#allocation2 + $0x1d0] sm:$0xff] }
 0x181   : > { %v1555_v53 = vadd.f32 %v1523_v47, %v1455_v50  ;;  %v1855_v37 = vadd.f32 %v1823_v29, %v1755_v26  ;;  %v1824_v1 = vmul.f32 %v3242_v33, %v3941_v3  ;;  %v1355_v28 = vadd.f32 %v1323_v19, %v1255_v18  ;;  %v3993_v55 = vld [vmem:[#allocation2 + $0x1d1] sm:$0xff] }
 0x182   : > { %v1993_v2 = vadd.f32 %v3843_v42, %v1954_v27  ;;  %2853 = vmatprep.mubr.msk.f32.mxu1 %vm971_vm2, %v2056_v30  ;;  %v1924_v11 = vmul.f32 %v3257_v54, %v3945_v44  ;;  %v1124_v59 = vmul.f32 %v3881_v14, %v3227_v16  ;;  %v1224_v48 = vmul.f32 %v3889_v9, %v3221_v10 }
 0x183   : > { %v1655_v49 = vadd.f32 %v1623_v31, %v1555_v53  ;;  %v1955_v12 = vadd.f32 %v1923_v35, %v1855_v37  ;;  %v1456_v51 = vadd.f32 %v1424_v5, %v1355_v28  ;;  %v1524_v0 = vmul.f32 %v3915_v60, %v3235_v23 }
 0x184   : > { %v2025_v6 = vmax.f32 %v1993_v2, 0.0  ;;  %v1256_v43 = vadd.f32 %v1224_v48, %v1124_v59  ;;  %v1324_v14 = vmul.f32 %v3891_v38, %v3229_v17  ;;  %v1425_v9 = vmul.f32 %v3933_v32, %v3232_v20  ;;  %v4019_v48 = vld [vmem:[#allocation2 + $0x1e8] sm:$0xff] }
 0x185   : > { %v1756_v57 = vadd.f32 %v1724_v15, %v1655_v49  ;;  %v1994_v46 = vadd.f32 %v3843_v42, %v1955_v12  ;;  %v1556_v61 = vadd.f32 %v1524_v0, %v1456_v51  ;;  %v1624_v7 = vmul.f32 %v3917_v63, %v3237_v24 }
 0x186   : > { %v2057_v58 = vmin.f32 %v2025_v6, 6.0  ;;  %v1725_v8 = vmul.f32 %v3239_v25, %v3965_v56  ;;  %v1825_v34 = vmul.f32 %v3242_v33, %v3967_v21  ;;  %v1356_v13 = vadd.f32 %v1324_v14, %v1256_v43  ;;  %v4021_v6 = vld [vmem:[#allocation2 + $0x1e9] sm:$0xff] }
 0x187   : > { %v1856_v52 = vadd.f32 %v1824_v1, %v1756_v57  ;;  %v2026_v38 = vmax.f32 %v1994_v46, 0.0  ;;  %v1656_v62 = vadd.f32 %v1624_v7, %v1556_v61  ;;  %v1925_v29 = vmul.f32 %v3257_v54, %v3969_v22 }
 0x188   : > { %2854 = vmatmul.mubr.msk.f32.gmra.mrb[22].mxu1 %vm971_vm2, %v2057_v58  ;;  %v1125_v35 = vmul.f32 %v3907_v45, %v3227_v16  ;;  %v1457_v4 = vadd.f32 %v1425_v9, %v1356_v13  ;;  %v1525_v41 = vmul.f32 %v3941_v3, %v3235_v23  ;;  %v1225_v50 = vmul.f32 %v3915_v60, %v3221_v10 }
 0x189   : > { %v1956_v40 = vadd.f32 %v1924_v11, %v1856_v52  ;;  %v2058_v47 = vmin.f32 %v2026_v38, 6.0  ;;  %v1757_v19 = vadd.f32 %v1725_v8, %v1656_v62  ;;  %v1625_v27 = vmul.f32 %v3945_v44, %v3237_v24 }
 0x18a   : > { %v1325_v45 = vmul.f32 %v3917_v63, %v3229_v17  ;;  %v1557_v18 = vadd.f32 %v1525_v41, %v1457_v4  ;;  %v1257_v5 = vadd.f32 %v1225_v50, %v1125_v35  ;;  %v1426_v30 = vmul.f32 %v3965_v56, %v3232_v20  ;;  %v4011_v63 = vld [vmem:[#allocation2 + $0x1e7] sm:$0xff]  ;;  %v4045_v35 = vld [vmem:[#allocation2 + $0x1f0] sm:$0xff] }
 0x18b   : > { %v1995_v26 = vadd.f32 %v3843_v42, %v1956_v40  ;;  %2856 = vmatprep.mubr.msk.f32.mxu1 %vm971_vm2, %v2058_v47  ;;  %v1857_v53 = vadd.f32 %v1825_v34, %v1757_v19  ;;  %v1726_v60 = vmul.f32 %v3239_v25, %v3989_v36  ;;  %v1826_v31 = vmul.f32 %v3242_v33, %v3991_v39  ;;  %v4037_v34 = vld [vmem:[#allocation2 + $0x1ef] sm:$0xff] }
 0x18c   : > { %v1926_v15 = vmul.f32 %v3257_v54, %v3993_v55  ;;  %v1657_v37 = vadd.f32 %v1625_v27, %v1557_v18  ;;  %v1357_v1 = vadd.f32 %v1325_v45, %v1257_v5  ;;  %v1126_v28 = vmul.f32 %v3933_v32, %v3227_v16  ;;  %v4047_v40 = vld [vmem:[#allocation2 + $0x1f1] sm:$0xff] }
 0x18d   : > { %v2027_v2 = vmax.f32 %v1995_v26, 0.0  ;;  %v1957_v49 = vadd.f32 %v1925_v29, %v1857_v53  ;;  %v1526_v11 = vmul.f32 %v3967_v21, %v3235_v23  ;;  %v1626_v59 = vmul.f32 %v3969_v22, %v3237_v24 }
 0x18e   : > { %v1226_v12 = vmul.f32 %v3941_v3, %v3221_v10  ;;  %v1758_v0 = vadd.f32 %v1726_v60, %v1657_v37  ;;  %v1458_v57 = vadd.f32 %v1426_v30, %v1357_v1  ;;  %v1727_v32 = vmul.f32 %v3239_v25, %v4011_v63  ;;  %v1693_v60 = vld [vmem:[#allocation2 + $0x207] sm:$0xff] }
 0x18f   : > { %v2059_v51 = vmin.f32 %v2027_v2, 6.0  ;;  %v1996_v43 = vadd.f32 %v3843_v42, %v1957_v49  ;;  %v1326_v9 = vmul.f32 %v3945_v44, %v3229_v17  ;;  %v1427_v58 = vmul.f32 %v3989_v36, %v3232_v20  ;;  %v1893_v49 = vld [vmem:[#allocation2 + $0x209] sm:$0xff] }
 0x190   : > { %v1258_v14 = vadd.f32 %v1226_v12, %v1126_v28  ;;  %v1858_v46 = vadd.f32 %v1826_v31, %v1758_v0  ;;  %v1558_v61 = vadd.f32 %v1526_v11, %v1458_v57  ;;  %v1827_v3 = vmul.f32 %v3242_v33, %v4019_v48  ;;  %v1793_v28 = vld [vmem:[#allocation2 + $0x208] sm:$0xff] }
 0x191   : > { %2857 = vmatmul.mubr.msk.f32.gmra.mrb[24].mxu1 %vm971_vm2, %v2059_v51  ;;  %v1927_v7 = vmul.f32 %v3257_v54, %v4021_v6  ;;  %v2028_v52 = vmax.f32 %v1996_v43, 0.0  ;;  %v1127_v44 = vmul.f32 %v3965_v56, %v3227_v16  ;;  %v1227_v13 = vmul.f32 %v3967_v21, %v3221_v10 }
 0x192   : > { %v1358_v8 = vadd.f32 %v1326_v9, %v1258_v14  ;;  %v1958_v38 = vadd.f32 %v1926_v15, %v1858_v46  ;;  %v1658_v62 = vadd.f32 %v1626_v59, %v1558_v61  ;;  %v1527_v29 = vmul.f32 %v3991_v39, %v3235_v23  ;;  %v1694_v61 = vld [vmem:[#allocation2 + $0x20f] sm:$0xff] }
 0x193   : > { %v1327_v4 = vmul.f32 %v3969_v22, %v3229_v17  ;;  %v2060_v41 = vmin.f32 %v2028_v52, 6.0  ;;  %v1259_v47 = vadd.f32 %v1227_v13, %v1127_v44  ;;  %v1428_v56 = vmul.f32 %v4011_v63, %v3232_v20  ;;  %v1794_v13 = vld [vmem:[#allocation2 + $0x210] sm:$0xff] }
 0x194   : > { %v1459_v50 = vadd.f32 %v1427_v58, %v1358_v8  ;;  %v1997_v21 = vadd.f32 %v3843_v42, %v1958_v38  ;;  %v1759_v19 = vadd.f32 %v1727_v32, %v1658_v62  ;;  %v1627_v27 = vmul.f32 %v3993_v55, %v3237_v24 }
 0x195   : > { %v1728_v45 = vmul.f32 %v3239_v25, %v4037_v34  ;;  %2859 = vmatprep.mubr.msk.f32.mxu1 %vm971_vm2, %v2060_v41  ;;  %v1828_v22 = vmul.f32 %v3242_v33, %v4045_v35  ;;  %v1928_v18 = vmul.f32 %v3257_v54, %v4047_v40  ;;  %v1359_v5 = vadd.f32 %v1327_v4, %v1259_v47 }
 0x196   : > { %v1559_v26 = vadd.f32 %v1527_v29, %v1459_v50  ;;  %v2029_v30 = vmax.f32 %v1997_v21, 0.0  ;;  %v1859_v53 = vadd.f32 %v1827_v3, %v1759_v19  ;;  %v1128_v31 = vmul.f32 %v3989_v36, %v3227_v16 }
 0x197   : > { %v1228_v15 = vmul.f32 %v3991_v39, %v3221_v10  ;;  %v1460_v37 = vadd.f32 %v1428_v56, %v1359_v5  ;;  %v1528_v1 = vmul.f32 %v4019_v48, %v3235_v23  ;;  %v1328_v11 = vmul.f32 %v3993_v55, %v3229_v17 }
 0x198   : > { %v1659_v2 = vadd.f32 %v1627_v27, %v1559_v26  ;;  %v2061_v59 = vmin.f32 %v2029_v30, 6.0  ;;  %v1959_v12 = vadd.f32 %v1927_v7, %v1859_v53  ;;  %v1429_v0 = vmul.f32 %v4037_v34, %v3232_v20  ;;  %v1695_v26 = vld [vmem:[#allocation2 + $0x227] sm:$0xff]  ;;  %v1894_v53 = vld [vmem:[#allocation2 + $0x211] sm:$0xff] }
 0x199   : > { %v1260_v51 = vadd.f32 %v1228_v15, %v1128_v31  ;;  %v1560_v57 = vadd.f32 %v1528_v1, %v1460_v37  ;;  %v1628_v39 = vmul.f32 %v4021_v6, %v3237_v24  ;;  %v1729_v32 = vmul.f32 %v3239_v25, %v1693_v60 }
 0x19a   : > { %v1760_v36 = vadd.f32 %v1728_v45, %v1659_v2  ;;  %2860 = vmatmul.mubr.msk.f32.gmra.mrb[26].mxu1 %vm971_vm2, %v2061_v59  ;;  %v1998_v43 = vadd.f32 %v3843_v42, %v1959_v12  ;;  %v1829_v14 = vmul.f32 %v3242_v33, %v1793_v28  ;;  %v1929_v55 = vmul.f32 %v3257_v54, %v1893_v49  ;;  %v1795_v2 = vld [vmem:[#allocation2 + $0x228] sm:$0xff] }
 0x19b   : > { %v1360_v9 = vadd.f32 %v1328_v11, %v1260_v51  ;;  %v1660_v46 = vadd.f32 %v1628_v39, %v1560_v57  ;;  %v1129_v3 = vmul.f32 %v4011_v63, %v3227_v16  ;;  %v1229_v7 = vmul.f32 %v4019_v48, %v3221_v10  ;;  %v1895_v12 = vld [vmem:[#allocation2 + $0x229] sm:$0xff] }
 0x19c   : > { %v1860_v58 = vadd.f32 %v1828_v22, %v1760_v36  ;;  %v2030_v52 = vmax.f32 %v1998_v43, 0.0  ;;  %v1529_v44 = vmul.f32 %v4045_v35, %v3235_v23  ;;  %v1329_v38 = vmul.f32 %v4021_v6, %v3229_v17 }
 0x19d   : > { %v1461_v8 = vadd.f32 %v1429_v0, %v1360_v9  ;;  %v1761_v29 = vadd.f32 %v1729_v32, %v1660_v46  ;;  %v1261_v4 = vadd.f32 %v1229_v7, %v1129_v3  ;;  %v1430_v41 = vmul.f32 %v1693_v60, %v3232_v20  ;;  %v1896_v3 = vld [vmem:[#allocation2 + $0x231] sm:$0xff] }
 0x19e   : > { %v1960_v62 = vadd.f32 %v1928_v18, %v1860_v58  ;;  %v2062_v50 = vmin.f32 %v2030_v52, 6.0  ;;  %v1629_v63 = vmul.f32 %v4047_v40, %v3237_v24  ;;  %v1730_v48 = vmul.f32 %v3239_v25, %v1694_v61 }
 0x19f   : > { %v1561_v47 = vadd.f32 %v1529_v44, %v1461_v8  ;;  %v1861_v21 = vadd.f32 %v1829_v14, %v1761_v29  ;;  %v1830_v19 = vmul.f32 %v3242_v33, %v1794_v13  ;;  %v1361_v27 = vadd.f32 %v1329_v38, %v1261_v4  ;;  %v1796_v14 = vld [vmem:[#allocation2 + $0x230] sm:$0xff] }
 0x1a0   : > { %v1999_v56 = vadd.f32 %v3843_v42, %v1960_v62  ;;  %2862 = vmatprep.mubr.msk.f32.mxu1 %vm971_vm2, %v2062_v50  ;;  %v1530_v45 = vmul.f32 %v1793_v28, %v3235_v23  ;;  %v1130_v22 = vmul.f32 %v4037_v34, %v3227_v16  ;;  %v1230_v18 = vmul.f32 %v4045_v35, %v3221_v10 }
 0x1a1   : > { %v1661_v6 = vadd.f32 %v1629_v63, %v1561_v47  ;;  %v1961_v30 = vadd.f32 %v1929_v55, %v1861_v21  ;;  %v1462_v60 = vadd.f32 %v1430_v41, %v1361_v27  ;;  %v1630_v31 = vmul.f32 %v1893_v49, %v3237_v24 }
 0x1a2   : > { %v2031_v5 = vmax.f32 %v1999_v56, 0.0  ;;  %v1262_v37 = vadd.f32 %v1230_v18, %v1130_v22  ;;  %v1330_v1 = vmul.f32 %v4047_v40, %v3229_v17  ;;  %v1431_v28 = vmul.f32 %v1694_v61, %v3232_v20  ;;  %v1696_v17 = vld [vmem:[#allocation2 + $0x22f] sm:$0xff]  ;;  %v2905_v18 = vld [vmem:[%s3041_s21 + $0x18] sm:$0xff] }
 0x1a3   : > { %v1762_v15 = vadd.f32 %v1730_v48, %v1661_v6  ;;  %v2000_v16 = vadd.f32 %v3843_v42, %v1961_v30  ;;  %v1562_v34 = vadd.f32 %v1530_v45, %v1462_v60  ;;  %v1731_v10 = vmul.f32 %v3239_v25, %v1695_v26  ;;  %v2903_v56 = vld [vmem:[%s3041_s21 + $0x8] sm:$0xff]  ;;  %v2906_v30 = vld [vmem:[%s3041_s21 + $0x10] sm:$0xff] }
 0x1a4   : > { %v2063_v11 = vmin.f32 %v2031_v5, 6.0  ;;  %v1930_v59 = vmul.f32 %v3257_v54, %v1894_v53  ;;  %v1362_v51 = vadd.f32 %v1330_v1, %v1262_v37  ;;  %v1831_v36 = vmul.f32 %v3242_v33, %v1795_v2  ;;  %v2907_v37 = vld [vmem:[%s3041_s21 + $0x28] sm:$0xff] }
 0x1a5   : > { %v1862_v35 = vadd.f32 %v1830_v19, %v1762_v15  ;;  %v2032_v49 = vmax.f32 %v2000_v16, 0.0  ;;  %v1662_v0 = vadd.f32 %v1630_v31, %v1562_v34  ;;  %v1531_v57 = vmul.f32 %v1794_v13, %v3235_v23  ;;  %v2904_v19 = vld [vmem:[%s3041_s21] sm:$0xff] }
 0x1a6   : > { %2863 = vmatmul.mubr.msk.f32.gmra.mrb[28].mxu1 %vm971_vm2, %v2063_v11  ;;  %v1463_v20 = vadd.f32 %v1431_v28, %v1362_v51  ;;  %v1931_v43 = vmul.f32 %v3257_v54, %v1895_v12  ;;  %v1631_v58 = vmul.f32 %v1894_v53, %v3237_v24  ;;  %v1732_v46 = vmul.f32 %v3239_v25, %v1696_v17  ;;  %v2908_v28 = vld [vmem:[%s3041_s21 + $0x20] sm:$0xff]  ;;  %v2910_v51 = vld [vmem:[%s3041_s21 + $0x30] sm:$0xff] }
 0x1a7   : > { %v1962_v40 = vadd.f32 %v1930_v59, %v1862_v35  ;;  %v2064_v39 = vmin.f32 %v2032_v49, 6.0  ;;  %v1763_v32 = vadd.f32 %v1731_v10, %v1662_v0  ;;  %v1832_v23 = vmul.f32 %v3242_v33, %v1796_v14  ;;  %v2909_v59 = vld [vmem:[%s3041_s21 + $0x38] sm:$0xff] }
 0x1a8   : > { %v1563_v9 = vadd.f32 %v1531_v57, %v1463_v20  ;;  %v1932_v38 = vmul.f32 %v3257_v54, %v1896_v3  ;;  %v4125_v54 = vld [vmem:[%s4278_s8] ss:$0 sm:$0xff]  ;;  %v2911_v20 = vld [vmem:[%s3041_s21 + $0x48] sm:$0xff] }
 0x1a9   : > { %v2001_v55 = vadd.f32 %v3843_v42, %v1962_v40  ;;  %2865 = vmatprep.mubr.msk.f32.mxu1 %vm971_vm2, %v2064_v39  ;;  %v1863_v61 = vadd.f32 %v1831_v36, %v1763_v32  ;;  %v2912_v39 = vld [vmem:[%s3041_s21 + $0x40] sm:$0xff] }
 0x1aa   : > { %v1663_v52 = vadd.f32 %v1631_v58, %v1563_v9  ;;  %v2913_v58 = vld [vmem:[%s3041_s21 + $0x58] sm:$0xff] }
 0x1ab   : > { %v2033_v7 = vmax.f32 %v2001_v55, 0.0  ;;  %v1963_v8 = vadd.f32 %v1931_v43, %v1863_v61  ;;  %v2914_v61 = vld [vmem:[%s3041_s21 + $0x50] sm:$0xff] }
 0x1ac   : > { %v1764_v13 = vadd.f32 %v1732_v46, %v1663_v52 }
 0x1ad   : > { %v2065_v44 = vmin.f32 %v2033_v7, 6.0  ;;  %v2002_v62 = vadd.f32 %v3843_v42, %v1963_v8 }
 0x1ae   : > { %v1864_v24 = vadd.f32 %v1832_v23, %v1764_v13 }
 0x1af   : > { %2866 = vmatmul.mubr.msk.f32.gmra.mrb[30].mxu1 %vm971_vm2, %v2065_v44  ;;  %v2034_v25 = vmax.f32 %v2002_v62, 0.0  ;;  %v2915_v44 = vld [vmem:[%s3041_s21 + $0x68] sm:$0xff] }
 0x1b0   : > { %v1964_v29 = vadd.f32 %v1932_v38, %v1864_v24  ;;  %v2916_v38 = vld [vmem:[%s3041_s21 + $0x60] sm:$0xff] }
 0x1b1   : > { %v2066_v4 = vmin.f32 %v2034_v25, 6.0 }
 0x1b2   : > { %v2003_v41 = vadd.f32 %v3843_v42, %v1964_v29 }
 0x1b3   : > { %2868 = vmatprep.mubr.msk.f32.mxu1 %vm971_vm2, %v2066_v4 }
 0x1b4   : > { %v2035_v33 = vmax.f32 %v2003_v41, 0.0  ;;  %v2917_v41 = vld [vmem:[%s3041_s21 + $0x78] sm:$0xff] }
 0x1b6   : > { %v2067_v50 = vmin.f32 %v2035_v33, 6.0 }
 0x1b8   : > { %2869 = vmatmul.mubr.msk.f32.gmra.mrb[32].mxu1 %vm971_vm2, %v2067_v50  ;;  %v2918_v50 = vld [vmem:[%s3041_s21 + $0x70] sm:$0xff] }
 0x1e5   : > { %v2825_v47 = vpop.f32.mrb[2].mxu1 }
 0x1e6   : > { %v2245_v63 = vadd.f32 %v2825_v47, %v4125_v54  ;;  %v2239_v48 = vpop.f32.mrb[3].mxu1 }
 0x1e7   : > { %v2240_v42 = vadd.f32 %v4125_v54, %v2239_v48 }
 0x1e8   : > { %v2399_v21 = vadd.f32 %v2903_v56, %v2245_v63 }
 0x1e9   : > { %v2398_v27 = vadd.f32 %v2904_v19, %v2240_v42 }
 0x1ea   : > { %2431 = vst.msk [vmem:[%s4132_s30 + $0x8] sm:$0xff] %vm545_vm0, %v2399_v21  ;;  %v2919_v21 = vld [vmem:[%s3041_s21 + $0x88] sm:$0xff] }
 0x1eb   : > { %2430 = vst.msk [vmem:[%s4132_s30] sm:$0xff] %vm545_vm0, %v2398_v27  ;;  %v2920_v27 = vld [vmem:[%s3041_s21 + $0x80] sm:$0xff] }
 0x1f6   : > { %v2828_v6 = vpop.f32.mrb[4].mxu1 }
 0x1f7   : > { %v2255_v45 = vadd.f32 %v2828_v6, %v4125_v54  ;;  %v2249_v26 = vpop.f32.mrb[5].mxu1 }
 0x1f8   : > { %v2250_v22 = vadd.f32 %v4125_v54, %v2249_v26 }
 0x1f9   : > { %v2401_v5 = vadd.f32 %v2905_v18, %v2255_v45 }
 0x1fa   : > { %v2400_v53 = vadd.f32 %v2906_v30, %v2250_v22 }
 0x1fb   : > { %2433 = vst.msk [vmem:[%s4132_s30 + $0x18] sm:$0xff] %vm545_vm0, %v2401_v5  ;;  %v2921_v5 = vld [vmem:[%s3041_s21 + $0x98] sm:$0xff] }
 0x1fc   : > { %2432 = vst.msk [vmem:[%s4132_s30 + $0x10] sm:$0xff] %vm545_vm0, %v2400_v53  ;;  %v2922_v53 = vld [vmem:[%s3041_s21 + $0x90] sm:$0xff] }
 0x205   : > { %v2831_v60 = vpop.f32.mrb[6].mxu1 }
 0x206   : > { %v2265_v31 = vadd.f32 %v2831_v60, %v4125_v54  ;;  %v2259_v15 = vpop.f32.mrb[7].mxu1 }
 0x207   : > { %v2260_v2 = vadd.f32 %v4125_v54, %v2259_v15 }
 0x208   : > { %v2403_v1 = vadd.f32 %v2907_v37, %v2265_v31 }
 0x209   : > { %v2402_v11 = vadd.f32 %v2908_v28, %v2260_v2 }
 0x20a   : > { %2435 = vst.msk [vmem:[%s4132_s30 + $0x28] sm:$0xff] %vm545_vm0, %v2403_v1  ;;  %v2923_v1 = vld [vmem:[%s3041_s21 + $0xa8] sm:$0xff] }
 0x20b   : > { %2434 = vst.msk [vmem:[%s4132_s30 + $0x20] sm:$0xff] %vm545_vm0, %v2402_v11  ;;  %v2924_v11 = vld [vmem:[%s3041_s21 + $0xa0] sm:$0xff] }
 0x20f   : > { %v2834_v16 = vpop.f32.mrb[8].mxu1 }
 0x210   : > { %v2275_v34 = vadd.f32 %v2834_v16, %v4125_v54  ;;  %v2269_v10 = vpop.f32.mrb[9].mxu1 }
 0x211   : > { %v2270_v35 = vadd.f32 %v4125_v54, %v2269_v10 }
 0x212   : > { %v2405_v12 = vadd.f32 %v2909_v59, %v2275_v34 }
 0x213   : > { %v2404_v49 = vadd.f32 %v2910_v51, %v2270_v35 }
 0x214   : > { %2437 = vst.msk [vmem:[%s4132_s30 + $0x38] sm:$0xff] %vm545_vm0, %v2405_v12  ;;  %v2925_v12 = vld [vmem:[%s3041_s21 + $0xb8] sm:$0xff] }
 0x215   : > { %2436 = vst.msk [vmem:[%s4132_s30 + $0x30] sm:$0xff] %vm545_vm0, %v2404_v49  ;;  %v2926_v49 = vld [vmem:[%s3041_s21 + $0xb0] sm:$0xff] }
 0x21a   : > { %v2837_v0 = vpop.f32.mrb[10].mxu1 }
 0x21b   : > { %v2285_v36 = vadd.f32 %v2837_v0, %v4125_v54  ;;  %v2279_v17 = vpop.f32.mrb[11].mxu1 }
 0x21c   : > { %v2280_v40 = vadd.f32 %v4125_v54, %v2279_v17 }
 0x21d   : > { %v2407_v57 = vadd.f32 %v2911_v20, %v2285_v36 }
 0x21e   : > { %v2406_v32 = vadd.f32 %v2912_v39, %v2280_v40 }
 0x21f   : > { %2439 = vst.msk [vmem:[%s4132_s30 + $0x48] sm:$0xff] %vm545_vm0, %v2407_v57  ;;  %v2927_v57 = vld [vmem:[%s3041_s21 + $0xc8] sm:$0xff] }
 0x220   : > { %2438 = vst.msk [vmem:[%s4132_s30 + $0x40] sm:$0xff] %vm545_vm0, %v2406_v32  ;;  %v2928_v32 = vld [vmem:[%s3041_s21 + $0xc0] sm:$0xff] }
 0x226   : > { %v2840_v43 = vpop.f32.mrb[12].mxu1 }
 0x227   : > { %v2295_v14 = vadd.f32 %v2840_v43, %v4125_v54  ;;  %v2289_v55 = vpop.f32.mrb[13].mxu1 }
 0x228   : > { %v2290_v9 = vadd.f32 %v4125_v54, %v2289_v55 }
 0x229   : > { %v2409_v46 = vadd.f32 %v2913_v58, %v2295_v14 }
 0x22a   : > { %v2408_v3 = vadd.f32 %v2914_v61, %v2290_v9 }
 0x22b   : > { %2441 = vst.msk [vmem:[%s4132_s30 + $0x58] sm:$0xff] %vm545_vm0, %v2409_v46  ;;  %v2929_v46 = vld [vmem:[%s3041_s21 + $0xd8] sm:$0xff] }
 0x22c   : > { %2440 = vst.msk [vmem:[%s4132_s30 + $0x50] sm:$0xff] %vm545_vm0, %v2408_v3  ;;  %v2930_v3 = vld [vmem:[%s3041_s21 + $0xd0] sm:$0xff] }
 0x231   : > { %v2843_v7 = vpop.f32.mrb[14].mxu1 }
 0x232   : > { %v2305_v52 = vadd.f32 %v2843_v7, %v4125_v54  ;;  %v2299_v23 = vpop.f32.mrb[15].mxu1 }
 0x233   : > { %v2300_v8 = vadd.f32 %v4125_v54, %v2299_v23 }
 0x234   : > { %v2411_v13 = vadd.f32 %v2915_v44, %v2305_v52 }
 0x235   : > { %v2410_v62 = vadd.f32 %v2916_v38, %v2300_v8 }
 0x236   : > { %2443 = vst.msk [vmem:[%s4132_s30 + $0x68] sm:$0xff] %vm545_vm0, %v2411_v13  ;;  %v2931_v13 = vld [vmem:[%s3041_s21 + $0xe8] sm:$0xff] }
 0x237   : > { %2442 = vst.msk [vmem:[%s4132_s30 + $0x60] sm:$0xff] %vm545_vm0, %v2410_v62  ;;  %v2932_v62 = vld [vmem:[%s3041_s21 + $0xe0] sm:$0xff] }
 0x23c   : > { %v2846_v24 = vpop.f32.mrb[16].mxu1 }
 0x23d   : > { %v2315_v25 = vadd.f32 %v2846_v24, %v4125_v54  ;;  %v2309_v29 = vpop.f32.mrb[17].mxu1 }
 0x23e   : > { %v2310_v4 = vadd.f32 %v4125_v54, %v2309_v29 }
 0x23f   : > { %v2413_v33 = vadd.f32 %v2917_v41, %v2315_v25 }
 0x240   : > { %v2412_v47 = vadd.f32 %v2918_v50, %v2310_v4 }
 0x241   : > { %2445 = vst.msk [vmem:[%s4132_s30 + $0x78] sm:$0xff] %vm545_vm0, %v2413_v33  ;;  %v2933_v33 = vld [vmem:[%s3041_s21 + $0xf8] sm:$0xff] }
 0x242   : > { %2444 = vst.msk [vmem:[%s4132_s30 + $0x70] sm:$0xff] %vm545_vm0, %v2412_v47  ;;  %v2934_v47 = vld [vmem:[%s3041_s21 + $0xf0] sm:$0xff] }
 0x246   : > { %v2849_v63 = vpop.f32.mrb[18].mxu1 }
 0x247   : > { %v2325_v48 = vadd.f32 %v2849_v63, %v4125_v54  ;;  %v2319_v42 = vpop.f32.mrb[19].mxu1 }
 0x248   : > { %v2320_v56 = vadd.f32 %v4125_v54, %v2319_v42 }
 0x249   : > { %v2415_v19 = vadd.f32 %v2919_v21, %v2325_v48 }
 0x24a   : > { %v2414_v6 = vadd.f32 %v2920_v27, %v2320_v56 }
 0x24b   : > { %2447 = vst.msk [vmem:[%s4132_s30 + $0x88] sm:$0xff] %vm545_vm0, %v2415_v19 }
 0x24c   : > { %2446 = vst.msk [vmem:[%s4132_s30 + $0x80] sm:$0xff] %vm545_vm0, %v2414_v6 }
 0x24f   : > { %v2852_v45 = vpop.f32.mrb[20].mxu1 }
 0x250   : > { %v2335_v26 = vadd.f32 %v2852_v45, %v4125_v54  ;;  %v2329_v22 = vpop.f32.mrb[21].mxu1 }
 0x251   : > { %v2330_v18 = vadd.f32 %v4125_v54, %v2329_v22 }
 0x252   : > { %v2417_v30 = vadd.f32 %v2921_v5, %v2335_v26 }
 0x253   : > { %v2416_v60 = vadd.f32 %v2922_v53, %v2330_v18 }
 0x254   : > { %2449 = vst.msk [vmem:[%s4132_s30 + $0x98] sm:$0xff] %vm545_vm0, %v2417_v30 }
 0x255   : > { %2448 = vst.msk [vmem:[%s4132_s30 + $0x90] sm:$0xff] %vm545_vm0, %v2416_v60 }
 0x25b   : > { %v2855_v31 = vpop.f32.mrb[22].mxu1 }
 0x25c   : > { %v2345_v15 = vadd.f32 %v2855_v31, %v4125_v54  ;;  %v2339_v2 = vpop.f32.mrb[23].mxu1 }
 0x25d   : > { %v2340_v37 = vadd.f32 %v4125_v54, %v2339_v2 }
 0x25e   : > { %v2419_v28 = vadd.f32 %v2923_v1, %v2345_v15 }
 0x25f   : > { %v2418_v16 = vadd.f32 %v2924_v11, %v2340_v37 }
 0x260   : > { %2451 = vst.msk [vmem:[%s4132_s30 + $0xa8] sm:$0xff] %vm545_vm0, %v2419_v28 }
 0x261   : > { %2450 = vst.msk [vmem:[%s4132_s30 + $0xa0] sm:$0xff] %vm545_vm0, %v2418_v16 }
 0x264   : > { %v2858_v34 = vpop.f32.mrb[24].mxu1 }
 0x265   : > { %v2355_v10 = vadd.f32 %v2858_v34, %v4125_v54  ;;  %v2349_v35 = vpop.f32.mrb[25].mxu1 }
 0x266   : > { %v2350_v59 = vadd.f32 %v4125_v54, %v2349_v35 }
 0x267   : > { %v2421_v51 = vadd.f32 %v2925_v12, %v2355_v10 }
 0x268   : > { %v2420_v0 = vadd.f32 %v2926_v49, %v2350_v59 }
 0x269   : > { %2453 = vst.msk [vmem:[%s4132_s30 + $0xb8] sm:$0xff] %vm545_vm0, %v2421_v51 }
 0x26a   : > { %2452 = vst.msk [vmem:[%s4132_s30 + $0xb0] sm:$0xff] %vm545_vm0, %v2420_v0 }
 0x26d   : > { %v2861_v36 = vpop.f32.mrb[26].mxu1 }
 0x26e   : > { %v2365_v17 = vadd.f32 %v2861_v36, %v4125_v54  ;;  %v2359_v40 = vpop.f32.mrb[27].mxu1 }
 0x26f   : > { %v2360_v20 = vadd.f32 %v4125_v54, %v2359_v40 }
 0x270   : > { %v2423_v39 = vadd.f32 %v2927_v57, %v2365_v17 }
 0x271   : > { %v2422_v43 = vadd.f32 %v2928_v32, %v2360_v20 }
 0x272   : > { %2455 = vst.msk [vmem:[%s4132_s30 + $0xc8] sm:$0xff] %vm545_vm0, %v2423_v39 }
 0x273   : > { %2454 = vst.msk [vmem:[%s4132_s30 + $0xc0] sm:$0xff] %vm545_vm0, %v2422_v43 }
 0x279   : > { %v2864_v14 = vpop.f32.mrb[28].mxu1 }
 0x27a   : > { %v2375_v55 = vadd.f32 %v2864_v14, %v4125_v54  ;;  %v2369_v9 = vpop.f32.mrb[29].mxu1 }
 0x27b   : > { %v2370_v58 = vadd.f32 %v4125_v54, %v2369_v9 }
 0x27c   : > { %v2425_v61 = vadd.f32 %v2929_v46, %v2375_v55 }
 0x27d   : > { %v2424_v7 = vadd.f32 %v2930_v3, %v2370_v58 }
 0x27e   : > { %2457 = vst.msk [vmem:[%s4132_s30 + $0xd8] sm:$0xff] %vm545_vm0, %v2425_v61 }
 0x27f   : > { %2456 = vst.msk [vmem:[%s4132_s30 + $0xd0] sm:$0xff] %vm545_vm0, %v2424_v7 }
 0x282   : > { %v2867_v52 = vpop.f32.mrb[30].mxu1 }
 0x283   : > { %v2385_v23 = vadd.f32 %v2867_v52, %v4125_v54  ;;  %v2379_v8 = vpop.f32.mrb[31].mxu1 }
 0x284   : > { %v2380_v44 = vadd.f32 %v4125_v54, %v2379_v8 }
 0x285   : > { %v2427_v38 = vadd.f32 %v2931_v13, %v2385_v23 }
 0x286   : > { %v2426_v24 = vadd.f32 %v2932_v62, %v2380_v44 }
 0x287   : > { %2459 = vst.msk [vmem:[%s4132_s30 + $0xe8] sm:$0xff] %vm545_vm0, %v2427_v38 }
 0x288   : > { %2458 = vst.msk [vmem:[%s4132_s30 + $0xe0] sm:$0xff] %vm545_vm0, %v2426_v24 }
 0x28b   : > { %v2870_v25 = vpop.f32.mrb[32].mxu1 }
 0x28c   : > { %v2395_v29 = vadd.f32 %v2870_v25, %v4125_v54  ;;  %v2389_v4 = vpop.f32.mrb[33].mxu1 }
 0x28d   : > { %v2390_v41 = vadd.f32 %v4125_v54, %v2389_v4 }
 0x28e   : > { %v2429_v50 = vadd.f32 %v2933_v33, %v2395_v29 }
 0x28f   : > { %v2428_v63 = vadd.f32 %v2934_v47, %v2390_v41 }
 0x290   : > { %2461 = vst.msk [vmem:[%s4132_s30 + $0xf8] sm:$0xff] %vm545_vm0, %v2429_v50 }
 0x291   : > { %2460 = vst.msk [vmem:[%s4132_s30 + $0xf0] sm:$0xff] %vm545_vm0, %v2428_v63 }
 0x292 PF: > { %s19_s11 = sadd.s32 1, %s2957_s11   ;;  %s4280_s30 = smov %s2953_s10 }
 0x293   : > { %p16_p5 = scmp.ge.s32.totalorder %s19_s11, 4   ;;  %s4281_s10 = smov %s4283_s12 }
 0x295   :  { %18 = sbr.rel (!%p16_p5) target bundleno = 2 (0x2), region = 103 }

</bundles_post_ra>
